<compile_context>
chip_gen: v5e
topology: v5e:2x2
jax: 0.10.0
libtpu: 0.0.40
codegen_flags: <defaults>
</compile_context>

<pallas_src>
import jax
import jax.numpy as jnp
from jax import lax
from jax.experimental import pallas as pl
from jax.experimental.pallas import tpu as pltpu


def sub_filter_start_end(kernel_size, sub_kernel_size):
    center = kernel_size // 2
    dev = sub_kernel_size // 2
    start, end = center - dev, center + dev + 1
    return start, end


def get_same_padding(kernel_size):
    assert kernel_size % 2 == 1, "kernel size should be odd"
    return kernel_size // 2


def _largest_divisor_at_most(n, cap):
    best = 1
    for d in range(1, n + 1):
        if n % d == 0 and d <= cap:
            best = d
    return best


def _dwconv_kernel_factory(K, H, W, Ho, Wo, pad, stride, dilation, Ct, Hs, out_dtype):
    """Depthwise-conv kernel body for static (K, H, W, stride, dilation, Ct)."""
    Hp, Wp = H + 2 * pad, W + 2 * pad

    def kernel(x_ref, w_ref, o_ref, xpad_ref):
        # x_ref:    (1, Ct, H, W)   raw (unpadded) input tile
        # w_ref:    (Ct, K, K)      depthwise filter taps
        # o_ref:    (1, Ct, Ho, Wo) output tile
        # xpad_ref: (Ct, Hp, Wp)    VMEM scratch holding the zero-padded input
        zdt = xpad_ref.dtype

        # ---- build the zero-padded input tile in VMEM (no extra HBM pass) ----
        if pad > 0:
            xpad_ref[:, :pad, :] = jnp.zeros((Ct, pad, Wp), zdt)
            xpad_ref[:, pad + H:, :] = jnp.zeros((Ct, pad, Wp), zdt)
            xpad_ref[:, :, :pad] = jnp.zeros((Ct, Hp, pad), zdt)
            xpad_ref[:, :, pad + W:] = jnp.zeros((Ct, Hp, pad), zdt)
        xpad_ref[:, pad:pad + H, pad:pad + W] = x_ref[0]

        # ---- hoist the weights and per-tap per-channel scalars out of the loops ----
        w = w_ref[...].astype(jnp.float32)                       # (Ct, K, K)
        taps = [w[:, i, j][:, None, None] for i in range(K) for j in range(K)]

        # ---- strip-mine output rows (Hs sublane rows per strip) ----
        # Each strip loads only its input rows (+halo) from the padded scratch and
        # keeps a small live f32 accumulator; the tap loop is pure per-lane VPU MACs.
        h0 = 0
        while h0 < Ho:
            rows = min(Hs, Ho - h0)
            rows_in = (rows - 1) * stride + (K - 1) * dilation + 1
            xs = xpad_ref[:, h0 * stride:h0 * stride + rows_in, :].astype(jnp.float32)
            acc = jnp.zeros((Ct, rows, Wo), jnp.float32)
            t = 0
            for i in range(K):
                for j in range(K):
                    # TODO(synk): for stride > 1 the per-tap strided lane slice costs
                    # XLU packs; pre-compacting strided columns once per strip would be
                    # cheaper. stride=1 (the common OFA case) takes the unit-stride path.
                    patch = lax.slice(
                        xs,
                        (0, i * dilation, j * dilation),
                        (Ct,
                         i * dilation + (rows - 1) * stride + 1,
                         j * dilation + (Wo - 1) * stride + 1),
                        (1, stride, stride),
                    )                                            # (Ct, rows, Wo)
                    acc = acc + patch * taps[t]
                    t += 1
            o_ref[0, :, h0:h0 + rows, :] = acc.astype(out_dtype)
            h0 += rows

    return kernel


class DynamicSeparableConv2d:
    """JAX/Pallas port of ofa.elastic_nn.modules.dynamic_op.DynamicSeparableConv2d
    with KERNEL_TRANSFORM_MODE = None (the default)."""

    KERNEL_TRANSFORM_MODE = None

    def __init__(self, max_in_channels, kernel_size_list, stride=1, dilation=1, *, key):
        self.max_in_channels = max_in_channels
        self.kernel_size_list = kernel_size_list
        self.stride = stride
        self.dilation = dilation
        kmax = max(kernel_size_list)
        # deterministic synthetic weight, same shape as nn.Conv2d(groups=C, bias=False)
        self.weight = jax.random.normal(
            key, (max_in_channels, 1, kmax, kmax), dtype=jnp.float32
        ) * 0.1
        self.active_kernel_size = kmax

    def get_active_filter(self, in_channel, kernel_size):
        kmax = max(self.kernel_size_list)
        start, end = sub_filter_start_end(kmax, kernel_size)
        # (out_c, 1, k, k) centered sub-filter (no kernel transform)
        return self.weight[:in_channel, :1, start:end, start:end]

    def __call__(self, x, kernel_size=None):
        # x: NCHW (stays NCHW end-to-end; no transposes, no out-of-kernel pad)
        if kernel_size is None:
            kernel_size = self.active_kernel_size
        N, C, H, W = x.shape
        k = int(kernel_size)
        s = int(self.stride)
        d = int(self.dilation)
        pad = get_same_padding(k)

        filters = self.get_active_filter(C, k)        # (C, 1, k, k) -- tiny slice
        w_ckk = filters[:, 0, :, :]                   # (C, k, k)

        Hp, Wp = H + 2 * pad, W + 2 * pad
        Ho = (H + 2 * pad - d * (k - 1) - 1) // s + 1
        Wo = (W + 2 * pad - d * (k - 1) - 1) // s + 1

        itemsize = jnp.dtype(x.dtype).itemsize
        Hs = 8  # output-row strip height (sublane aligned)

        # Channel tile: keep double-buffered in/out blocks + padded scratch under a
        # ~4 MiB VMEM budget and the per-strip f32 accumulator at a few vregs.
        per_chan_vmem = itemsize * (2 * (H * W + Ho * Wo) + Hp * Wp)
        per_chan_acc = 4 * min(Hs, Ho) * Wo
        cap = max(1, min((4 << 20) // max(1, per_chan_vmem),
                         (64 << 10) // max(1, per_chan_acc)))
        Ct = _largest_divisor_at_most(C, cap)

        kernel = _dwconv_kernel_factory(k, H, W, Ho, Wo, pad, s, d, Ct, Hs, x.dtype)

        # Explicit scoped-VMEM budget: double-buffered in/out/w blocks + padded scratch.
        block_bytes = (
            2 * itemsize * Ct * (H * W + Ho * Wo)
            + 2 * 4 * Ct * k * k
            + itemsize * Ct * Hp * Wp
        )
        vmem_limit = int(min(48 * (1 << 20), max(16 * (1 << 20), 2 * block_bytes)))

        y = pl.pallas_call(
            kernel,
            out_shape=jax.ShapeDtypeStruct((N, C, Ho, Wo), x.dtype),
            grid_spec=pltpu.PrefetchScalarGridSpec(
                num_scalar_prefetch=0,
                grid=(N, C // Ct),
                in_specs=[
                    pl.BlockSpec((1, Ct, H, W), lambda n, ci: (n, ci, 0, 0)),
                    pl.BlockSpec((Ct, k, k), lambda n, ci: (ci, 0, 0)),
                ],
                out_specs=pl.BlockSpec((1, Ct, Ho, Wo), lambda n, ci: (n, ci, 0, 0)),
                scratch_shapes=[pltpu.VMEM((Ct, Hp, Wp), x.dtype)],
            ),
            compiler_params=pltpu.CompilerParams(
                dimension_semantics=("parallel", "parallel"),
                vmem_limit_bytes=vmem_limit,
            ),
        )(x, w_ckk)
        return y


def _reference_depthwise_conv(x, filters, stride, padding, dilation):
    """Pure-JAX reference matching F.conv2d(x, filters, None, stride, pad, dil, groups=C)."""
    C = x.shape[1]
    return lax.conv_general_dilated(
        x, filters,
        window_strides=(stride, stride),
        padding=((padding, padding), (padding, padding)),
        rhs_dilation=(dilation, dilation),
        dimension_numbers=("NCHW", "OIHW", "NCHW"),
        feature_group_count=C,
    )


if __name__ == "__main__":
    key = jax.random.PRNGKey(0)
    k_w, k_x = jax.random.split(key)

    # Small shapes consistent with the module: batch=2, channels=4, spatial=16
    max_in_channels = 4
    kernel_size_list = [3, 5, 7]
    module = DynamicSeparableConv2d(
        max_in_channels, kernel_size_list, stride=1, dilation=1, key=k_w
    )

    x = jax.random.normal(k_x, (2, 4, 16, 16), dtype=jnp.float32)

    # Exercise elastic sub-kernel paths (3, 5) and the default max kernel (7)
    for active_k in (3, 5, None):
        if active_k is None:
            y = module(x)
            kk = module.active_kernel_size
        else:
            y = module(x, kernel_size=active_k)
            kk = active_k
        y = jax.block_until_ready(y)

        filters = module.get_active_filter(x.shape[1], kk)
        y_ref = _reference_depthwise_conv(
            x, filters, module.stride, get_same_padding(kk), module.dilation
        )
        assert y.shape == y_ref.shape == (2, 4, 16, 16)
        assert jnp.allclose(y, y_ref, atol=1e-4, rtol=1e-4), f"mismatch vs reference (k={kk})"

    print("KERNEL_OK")
</pallas_src>

<mosaic_0001>
module attributes {stable_mosaic.version = 11 : i64} {
  func.func @kernel(%arg0: i32, %arg1: i32, %arg2: memref<1x4x16x16xf32, #tpu.memory_space<vmem>>, %arg3: memref<4x3x3xf32, #tpu.memory_space<vmem>>, %arg4: memref<1x4x16x16xf32, #tpu.memory_space<vmem>>, %arg5: memref<4x18x18xf32, #tpu.memory_space<vmem>>) attributes {dimension_semantics = [#tpu.dimension_semantics<parallel>, #tpu.dimension_semantics<parallel>], iteration_bounds = array<i64: 2, 1>, scalar_prefetch = 0 : i64, scratch_operands = 1 : i64, tpu.core_type = #tpu.core_type<tc>, window_params = [{transform_indices = @transform_0, window_bounds = array<i64: 1, 4, 16, 16>}, {transform_indices = @transform_1, window_bounds = array<i64: 4, 3, 3>}, {transform_indices = @transform_2, window_bounds = array<i64: 1, 4, 16, 16>}]} {
    %cst = arith.constant 0.000000e+00 : f32
    %0 = vector.broadcast %cst : f32 to vector<4x1x18xf32>
    %c0 = arith.constant 0 : index
    %c0_0 = arith.constant 0 : index
    %c0_1 = arith.constant 0 : index
    %1 = vector.load %arg5[%c0, %c0_0, %c0_1] : memref<4x18x18xf32, #tpu.memory_space<vmem>>, vector<4x1x18xf32>
    tpu.vector_store %arg5[%c0, %c0_0, %c0_1], %0 {strides = array<i32>} : memref<4x18x18xf32, #tpu.memory_space<vmem>>, vector<4x1x18xf32>,
    %cst_2 = arith.constant 0.000000e+00 : f32
    %2 = vector.broadcast %cst_2 : f32 to vector<4x1x18xf32>
    %c0_3 = arith.constant 0 : index
    %c17 = arith.constant 17 : index
    %c0_4 = arith.constant 0 : index
    %3 = vector.load %arg5[%c0_3, %c17, %c0_4] : memref<4x18x18xf32, #tpu.memory_space<vmem>>, vector<4x1x18xf32>
    tpu.vector_store %arg5[%c0_3, %c17, %c0_4], %2 {strides = array<i32>} : memref<4x18x18xf32, #tpu.memory_space<vmem>>, vector<4x1x18xf32>,
    %cst_5 = arith.constant 0.000000e+00 : f32
    %4 = vector.broadcast %cst_5 : f32 to vector<4x18x1xf32>
    %c0_6 = arith.constant 0 : index
    %c0_7 = arith.constant 0 : index
    %c0_8 = arith.constant 0 : index
    %5 = vector.load %arg5[%c0_6, %c0_7, %c0_8] : memref<4x18x18xf32, #tpu.memory_space<vmem>>, vector<4x18x1xf32>
    tpu.vector_store %arg5[%c0_6, %c0_7, %c0_8], %4 {strides = array<i32>} : memref<4x18x18xf32, #tpu.memory_space<vmem>>, vector<4x18x1xf32>,
    %cst_9 = arith.constant 0.000000e+00 : f32
    %6 = vector.broadcast %cst_9 : f32 to vector<4x18x1xf32>
    %c0_10 = arith.constant 0 : index
    %c0_11 = arith.constant 0 : index
    %c17_12 = arith.constant 17 : index
    %7 = vector.load %arg5[%c0_10, %c0_11, %c17_12] : memref<4x18x18xf32, #tpu.memory_space<vmem>>, vector<4x18x1xf32>
    tpu.vector_store %arg5[%c0_10, %c0_11, %c17_12], %6 {strides = array<i32>} : memref<4x18x18xf32, #tpu.memory_space<vmem>>, vector<4x18x1xf32>,
    %c0_13 = arith.constant 0 : index
    %c0_14 = arith.constant 0 : index
    %c0_15 = arith.constant 0 : index
    %c0_16 = arith.constant 0 : index
    %8 = vector.load %arg2[%c0_13, %c0_14, %c0_15, %c0_16] : memref<1x4x16x16xf32, #tpu.memory_space<vmem>>, vector<1x4x16x16xf32>
    %9 = vector.shape_cast %8 : vector<1x4x16x16xf32> to vector<4x16x16xf32>
    %c0_17 = arith.constant 0 : index
    %c1 = arith.constant 1 : index
    %c1_18 = arith.constant 1 : index
    %10 = vector.load %arg5[%c0_17, %c1, %c1_18] : memref<4x18x18xf32, #tpu.memory_space<vmem>>, vector<4x16x16xf32>
    tpu.vector_store %arg5[%c0_17, %c1, %c1_18], %9 {strides = array<i32>} : memref<4x18x18xf32, #tpu.memory_space<vmem>>, vector<4x16x16xf32>,
    %c0_19 = arith.constant 0 : index
    %c0_20 = arith.constant 0 : index
    %c0_21 = arith.constant 0 : index
    %11 = vector.load %arg3[%c0_19, %c0_20, %c0_21] : memref<4x3x3xf32, #tpu.memory_space<vmem>>, vector<4x3x3xf32>
    %12 = vector.extract_strided_slice %11 {offsets = [0, 0, 0], sizes = [4, 1, 1], strides = [1, 1, 1]} : vector<4x3x3xf32> to vector<4x1x1xf32>
    %13 = vector.shape_cast %12 : vector<4x1x1xf32> to vector<4xf32>
    %14 = vector.shape_cast %13 : vector<4xf32> to vector<4x1x1xf32>
    %15 = vector.extract_strided_slice %11 {offsets = [0, 0, 1], sizes = [4, 1, 1], strides = [1, 1, 1]} : vector<4x3x3xf32> to vector<4x1x1xf32>
    %16 = vector.shape_cast %15 : vector<4x1x1xf32> to vector<4xf32>
    %17 = vector.shape_cast %16 : vector<4xf32> to vector<4x1x1xf32>
    %18 = vector.extract_strided_slice %11 {offsets = [0, 0, 2], sizes = [4, 1, 1], strides = [1, 1, 1]} : vector<4x3x3xf32> to vector<4x1x1xf32>
    %19 = vector.shape_cast %18 : vector<4x1x1xf32> to vector<4xf32>
    %20 = vector.shape_cast %19 : vector<4xf32> to vector<4x1x1xf32>
    %21 = vector.extract_strided_slice %11 {offsets = [0, 1, 0], sizes = [4, 1, 1], strides = [1, 1, 1]} : vector<4x3x3xf32> to vector<4x1x1xf32>
    %22 = vector.shape_cast %21 : vector<4x1x1xf32> to vector<4xf32>
    %23 = vector.shape_cast %22 : vector<4xf32> to vector<4x1x1xf32>
    %24 = vector.extract_strided_slice %11 {offsets = [0, 1, 1], sizes = [4, 1, 1], strides = [1, 1, 1]} : vector<4x3x3xf32> to vector<4x1x1xf32>
    %25 = vector.shape_cast %24 : vector<4x1x1xf32> to vector<4xf32>
    %26 = vector.shape_cast %25 : vector<4xf32> to vector<4x1x1xf32>
    %27 = vector.extract_strided_slice %11 {offsets = [0, 1, 2], sizes = [4, 1, 1], strides = [1, 1, 1]} : vector<4x3x3xf32> to vector<4x1x1xf32>
    %28 = vector.shape_cast %27 : vector<4x1x1xf32> to vector<4xf32>
    %29 = vector.shape_cast %28 : vector<4xf32> to vector<4x1x1xf32>
    %30 = vector.extract_strided_slice %11 {offsets = [0, 2, 0], sizes = [4, 1, 1], strides = [1, 1, 1]} : vector<4x3x3xf32> to vector<4x1x1xf32>
    %31 = vector.shape_cast %30 : vector<4x1x1xf32> to vector<4xf32>
    %32 = vector.shape_cast %31 : vector<4xf32> to vector<4x1x1xf32>
    %33 = vector.extract_strided_slice %11 {offsets = [0, 2, 1], sizes = [4, 1, 1], strides = [1, 1, 1]} : vector<4x3x3xf32> to vector<4x1x1xf32>
    %34 = vector.shape_cast %33 : vector<4x1x1xf32> to vector<4xf32>
    %35 = vector.shape_cast %34 : vector<4xf32> to vector<4x1x1xf32>
    %36 = vector.extract_strided_slice %11 {offsets = [0, 2, 2], sizes = [4, 1, 1], strides = [1, 1, 1]} : vector<4x3x3xf32> to vector<4x1x1xf32>
    %37 = vector.shape_cast %36 : vector<4x1x1xf32> to vector<4xf32>
    %38 = vector.shape_cast %37 : vector<4xf32> to vector<4x1x1xf32>
    %c0_22 = arith.constant 0 : index
    %c0_23 = arith.constant 0 : index
    %c0_24 = arith.constant 0 : index
    %39 = vector.load %arg5[%c0_22, %c0_23, %c0_24] : memref<4x18x18xf32, #tpu.memory_space<vmem>>, vector<4x10x18xf32>
    %cst_25 = arith.constant 0.000000e+00 : f32
    %40 = vector.broadcast %cst_25 : f32 to vector<4x8x16xf32>
    %41 = vector.extract_strided_slice %39 {offsets = [0, 0, 0], sizes = [4, 8, 16], strides = [1, 1, 1]} : vector<4x10x18xf32> to vector<4x8x16xf32>
    %42 = vector.broadcast %14 : vector<4x1x1xf32> to vector<4x8x16xf32>
    %43 = arith.mulf %41, %42 : vector<4x8x16xf32>
    %44 = arith.addf %40, %43 : vector<4x8x16xf32>
    %45 = vector.extract_strided_slice %39 {offsets = [0, 0, 1], sizes = [4, 8, 16], strides = [1, 1, 1]} : vector<4x10x18xf32> to vector<4x8x16xf32>
    %46 = vector.broadcast %17 : vector<4x1x1xf32> to vector<4x8x16xf32>
    %47 = arith.mulf %45, %46 : vector<4x8x16xf32>
    %48 = arith.addf %44, %47 : vector<4x8x16xf32>
    %49 = vector.extract_strided_slice %39 {offsets = [0, 0, 2], sizes = [4, 8, 16], strides = [1, 1, 1]} : vector<4x10x18xf32> to vector<4x8x16xf32>
    %50 = vector.broadcast %20 : vector<4x1x1xf32> to vector<4x8x16xf32>
    %51 = arith.mulf %49, %50 : vector<4x8x16xf32>
    %52 = arith.addf %48, %51 : vector<4x8x16xf32>
    %53 = vector.extract_strided_slice %39 {offsets = [0, 1, 0], sizes = [4, 8, 16], strides = [1, 1, 1]} : vector<4x10x18xf32> to vector<4x8x16xf32>
    %54 = vector.broadcast %23 : vector<4x1x1xf32> to vector<4x8x16xf32>
    %55 = arith.mulf %53, %54 : vector<4x8x16xf32>
    %56 = arith.addf %52, %55 : vector<4x8x16xf32>
    %57 = vector.extract_strided_slice %39 {offsets = [0, 1, 1], sizes = [4, 8, 16], strides = [1, 1, 1]} : vector<4x10x18xf32> to vector<4x8x16xf32>
    %58 = vector.broadcast %26 : vector<4x1x1xf32> to vector<4x8x16xf32>
    %59 = arith.mulf %57, %58 : vector<4x8x16xf32>
    %60 = arith.addf %56, %59 : vector<4x8x16xf32>
    %61 = vector.extract_strided_slice %39 {offsets = [0, 1, 2], sizes = [4, 8, 16], strides = [1, 1, 1]} : vector<4x10x18xf32> to vector<4x8x16xf32>
    %62 = vector.broadcast %29 : vector<4x1x1xf32> to vector<4x8x16xf32>
    %63 = arith.mulf %61, %62 : vector<4x8x16xf32>
    %64 = arith.addf %60, %63 : vector<4x8x16xf32>
    %65 = vector.extract_strided_slice %39 {offsets = [0, 2, 0], sizes = [4, 8, 16], strides = [1, 1, 1]} : vector<4x10x18xf32> to vector<4x8x16xf32>
    %66 = vector.broadcast %32 : vector<4x1x1xf32> to vector<4x8x16xf32>
    %67 = arith.mulf %65, %66 : vector<4x8x16xf32>
    %68 = arith.addf %64, %67 : vector<4x8x16xf32>
    %69 = vector.extract_strided_slice %39 {offsets = [0, 2, 1], sizes = [4, 8, 16], strides = [1, 1, 1]} : vector<4x10x18xf32> to vector<4x8x16xf32>
    %70 = vector.broadcast %35 : vector<4x1x1xf32> to vector<4x8x16xf32>
    %71 = arith.mulf %69, %70 : vector<4x8x16xf32>
    %72 = arith.addf %68, %71 : vector<4x8x16xf32>
    %73 = vector.extract_strided_slice %39 {offsets = [0, 2, 2], sizes = [4, 8, 16], strides = [1, 1, 1]} : vector<4x10x18xf32> to vector<4x8x16xf32>
    %74 = vector.broadcast %38 : vector<4x1x1xf32> to vector<4x8x16xf32>
    %75 = arith.mulf %73, %74 : vector<4x8x16xf32>
    %76 = arith.addf %72, %75 : vector<4x8x16xf32>
    %c0_26 = arith.constant 0 : index
    %c0_27 = arith.constant 0 : index
    %c0_28 = arith.constant 0 : index
    %c0_29 = arith.constant 0 : index
    %77 = vector.load %arg4[%c0_26, %c0_27, %c0_28, %c0_29] : memref<1x4x16x16xf32, #tpu.memory_space<vmem>>, vector<1x4x8x16xf32>
    %78 = vector.shape_cast %77 : vector<1x4x8x16xf32> to vector<4x8x16xf32>
    %79 = vector.shape_cast %76 : vector<4x8x16xf32> to vector<1x4x8x16xf32>
    tpu.vector_store %arg4[%c0_26, %c0_27, %c0_28, %c0_29], %79 {strides = array<i32>} : memref<1x4x16x16xf32, #tpu.memory_space<vmem>>, vector<1x4x8x16xf32>,
    %c0_30 = arith.constant 0 : index
    %c8 = arith.constant 8 : index
    %c0_31 = arith.constant 0 : index
    %80 = vector.load %arg5[%c0_30, %c8, %c0_31] : memref<4x18x18xf32, #tpu.memory_space<vmem>>, vector<4x10x18xf32>
    %cst_32 = arith.constant 0.000000e+00 : f32
    %81 = vector.broadcast %cst_32 : f32 to vector<4x8x16xf32>
    %82 = vector.extract_strided_slice %80 {offsets = [0, 0, 0], sizes = [4, 8, 16], strides = [1, 1, 1]} : vector<4x10x18xf32> to vector<4x8x16xf32>
    %83 = vector.broadcast %14 : vector<4x1x1xf32> to vector<4x8x16xf32>
    %84 = arith.mulf %82, %83 : vector<4x8x16xf32>
    %85 = arith.addf %81, %84 : vector<4x8x16xf32>
    %86 = vector.extract_strided_slice %80 {offsets = [0, 0, 1], sizes = [4, 8, 16], strides = [1, 1, 1]} : vector<4x10x18xf32> to vector<4x8x16xf32>
    %87 = vector.broadcast %17 : vector<4x1x1xf32> to vector<4x8x16xf32>
    %88 = arith.mulf %86, %87 : vector<4x8x16xf32>
    %89 = arith.addf %85, %88 : vector<4x8x16xf32>
    %90 = vector.extract_strided_slice %80 {offsets = [0, 0, 2], sizes = [4, 8, 16], strides = [1, 1, 1]} : vector<4x10x18xf32> to vector<4x8x16xf32>
    %91 = vector.broadcast %20 : vector<4x1x1xf32> to vector<4x8x16xf32>
    %92 = arith.mulf %90, %91 : vector<4x8x16xf32>
    %93 = arith.addf %89, %92 : vector<4x8x16xf32>
    %94 = vector.extract_strided_slice %80 {offsets = [0, 1, 0], sizes = [4, 8, 16], strides = [1, 1, 1]} : vector<4x10x18xf32> to vector<4x8x16xf32>
    %95 = vector.broadcast %23 : vector<4x1x1xf32> to vector<4x8x16xf32>
    %96 = arith.mulf %94, %95 : vector<4x8x16xf32>
    %97 = arith.addf %93, %96 : vector<4x8x16xf32>
    %98 = vector.extract_strided_slice %80 {offsets = [0, 1, 1], sizes = [4, 8, 16], strides = [1, 1, 1]} : vector<4x10x18xf32> to vector<4x8x16xf32>
    %99 = vector.broadcast %26 : vector<4x1x1xf32> to vector<4x8x16xf32>
    %100 = arith.mulf %98, %99 : vector<4x8x16xf32>
    %101 = arith.addf %97, %100 : vector<4x8x16xf32>
    %102 = vector.extract_strided_slice %80 {offsets = [0, 1, 2], sizes = [4, 8, 16], strides = [1, 1, 1]} : vector<4x10x18xf32> to vector<4x8x16xf32>
    %103 = vector.broadcast %29 : vector<4x1x1xf32> to vector<4x8x16xf32>
    %104 = arith.mulf %102, %103 : vector<4x8x16xf32>
    %105 = arith.addf %101, %104 : vector<4x8x16xf32>
    %106 = vector.extract_strided_slice %80 {offsets = [0, 2, 0], sizes = [4, 8, 16], strides = [1, 1, 1]} : vector<4x10x18xf32> to vector<4x8x16xf32>
    %107 = vector.broadcast %32 : vector<4x1x1xf32> to vector<4x8x16xf32>
    %108 = arith.mulf %106, %107 : vector<4x8x16xf32>
    %109 = arith.addf %105, %108 : vector<4x8x16xf32>
    %110 = vector.extract_strided_slice %80 {offsets = [0, 2, 1], sizes = [4, 8, 16], strides = [1, 1, 1]} : vector<4x10x18xf32> to vector<4x8x16xf32>
    %111 = vector.broadcast %35 : vector<4x1x1xf32> to vector<4x8x16xf32>
    %112 = arith.mulf %110, %111 : vector<4x8x16xf32>
    %113 = arith.addf %109, %112 : vector<4x8x16xf32>
    %114 = vector.extract_strided_slice %80 {offsets = [0, 2, 2], sizes = [4, 8, 16], strides = [1, 1, 1]} : vector<4x10x18xf32> to vector<4x8x16xf32>
    %115 = vector.broadcast %38 : vector<4x1x1xf32> to vector<4x8x16xf32>
    %116 = arith.mulf %114, %115 : vector<4x8x16xf32>
    %117 = arith.addf %113, %116 : vector<4x8x16xf32>
    %c0_33 = arith.constant 0 : index
    %c0_34 = arith.constant 0 : index
    %c8_35 = arith.constant 8 : index
    %c0_36 = arith.constant 0 : index
    %118 = vector.load %arg4[%c0_33, %c0_34, %c8_35, %c0_36] : memref<1x4x16x16xf32, #tpu.memory_space<vmem>>, vector<1x4x8x16xf32>
    %119 = vector.shape_cast %118 : vector<1x4x8x16xf32> to vector<4x8x16xf32>
    %120 = vector.shape_cast %117 : vector<4x8x16xf32> to vector<1x4x8x16xf32>
    tpu.vector_store %arg4[%c0_33, %c0_34, %c8_35, %c0_36], %120 {strides = array<i32>} : memref<1x4x16x16xf32, #tpu.memory_space<vmem>>, vector<1x4x8x16xf32>,
    return
  }
  func.func @transform_0(%arg0: i32, %arg1: i32) -> (i32, i32, i32, i32) {
    %c0_i32 = arith.constant 0 : i32
    %c0_i32_0 = arith.constant 0 : i32
    %c0_i32_1 = arith.constant 0 : i32
    return %arg0, %arg1, %c0_i32, %c0_i32_0 : i32, i32, i32, i32
  }
  func.func @transform_1(%arg0: i32, %arg1: i32) -> (i32, i32, i32) {
    %c0_i32 = arith.constant 0 : i32
    %c0_i32_0 = arith.constant 0 : i32
    %c0_i32_1 = arith.constant 0 : i32
    return %arg1, %c0_i32, %c0_i32_0 : i32, i32, i32
  }
  func.func @transform_2(%arg0: i32, %arg1: i32) -> (i32, i32, i32, i32) {
    %c0_i32 = arith.constant 0 : i32
    %c0_i32_0 = arith.constant 0 : i32
    %c0_i32_1 = arith.constant 0 : i32
    return %arg0, %arg1, %c0_i32, %c0_i32_0 : i32, i32, i32, i32
  }
}

</mosaic_0001>

<bundles_post_ra>
// kernel: tpu_custom_call.1
= control target key start
LH: loop header
LB: loop body
LE: loop exit
PB: predicated region body
PF: predicated region fallthrough
CT: control target
= control target key end

     0   :  { %s2441_s0 = inlined_call_operand.hbm [shape: f32[2,4,16,16], index: 0, kind: input, shape index: {}]   ;;  %s2442_s1 = inlined_call_operand.vmem [shape: f32[4,3,3], index: 1, kind: input, shape index: {}]   ;;  %s2443_s2 = inlined_call_operand.hbm [shape: f32[2,4,16,16], index: 2, kind: output, shape index: {}]  }
   0x1   :  { %2478 = sst [smem:[#allocation26_spill]] %s2441_s0 }
   0x2   :  { %2479 = sst [smem:[#allocation27_spill]] %s2442_s1 }
   0x3   :  { %7 = vsyncpa [#allocation4], 0 }
   0x4   :  { %9 = vsyncpa [#allocation4 + $0x1], 0 }
   0x5   :  { %10 = vsyncpa [#allocation5], 0 }
   0x6   :  { %12 = vsyncpa [#allocation5 + $0x1], 0  ;;  %s1518_s9 = smov 0   ;;  %s1520_s10 = smov 0  }
   0x7   :  { %s1522_s11 = smov 0   ;;  %s1524_s12 = smov 0  }
   0x8   :  { %s1526_s13 = smov 0   ;;  %s1528_s14 = smov 0  }
   0x9 LB: > { %s1221_s15 = sadd.s32 4294967295, %s1493_s14   ;;  %s1222_s16 = sadd.s32 4294967294, %s1493_s14   ;;  %s1493_s14 = sphi %s1528_s14, %s18_s14   ;;  %s1489_s13 = sphi %s1526_s13, %s2545_s13   ;;  %s1485_s12 = sphi %s1524_s12, %s2544_s12   ;;  %s1481_s11 = sphi %s1522_s11, %s2543_s11   ;;  %s1477_s10 = sphi %s1520_s10, %s2542_s10   ;;  %s1473_s9 = sphi %s1518_s9, %s2541_s9  }
   0xa   : > { %s30_s17 = sadd.s32 1, %s1489_s13  ;;  %s39_s18 = sadd.s32 1, %s1481_s11 }
   0xb   : > { %p32_p0 = scmp.ge.s32.totalorder %s30_s17, 2  ;;  %p46_p1 = scmp.ne.s32.totalorder %s1481_s11, %s1477_s10 }
   0xc   : > { %p47_p2 = scmp.eq.s32.totalorder %s1493_s14, 0  ;;  %p52_p3 = scmp.ne.s32.totalorder %s1477_s10, %s1473_s9 }
   0xd   : > { %s2547_s17 = smov (%p32_p0, %s30_s17), 0  ;;  %p53_p5 = scmp.eq.s32.totalorder %s1221_s15, 0 }
   0xe   : > { %p1559_p4 = por %p47_p2, %p46_p1  ;;  %s34_s20 = ssub.s32 %s1489_s13, %s2547_s17 }
   0xf   : > { %p104_p6 = scmp.eq.s32.totalorder %s1221_s15, 1  ;;  %p37_p7 = scmp.eq.s32.totalorder %s34_s20, 0 }
  0x10   : > { %p1565_p8 = por %p53_p5, %p52_p3  ;;  %p110_p10 = scmp.eq.s32.totalorder %s1222_s16, 1 }
  0x11   : > { %p1569_p9 = por %p104_p6, %p46_p1  ;;  %p1225_p12 = scmp.ge.s32.totalorder %s1493_s14, 2 }
  0x12   : > { %s1574_s23 = scalar_select %p37_p7, %s1481_s11, %s39_s18  }
  0x13   : > { %p1576_p11 = por %p110_p10, %p52_p3  ;;  %p1323_p13 = scmp.lt.s32.totalorder %s1493_s14, 2 }
  0x14   : > { %s139_s25 = sand.u32 1, %s1481_s11   ;;  %s1237_s27 = sshll.u32 %s1489_s13, 6 }
  0x15   : > { %s1226_s26 = sshll.u32 %s139_s25, 6  ;;  %s2484_s0 = sld [smem:[#allocation26_spill]] }
  0x16   : > { %s143_s3 = scalar_lea.vmem [#allocation3], %s1226_s26  ;;  %p1316_p0 = pnand %p1323_p13, %p1559_p4 }
  0x17   : > { %s154_s4 = sshll.u32 %s143_s3, 4  ;;  %p1229_p1 = scmp.ge.s32.totalorder %s1493_s14, 1  ;;  %s155_s4 = int_to_ptr.vmem [resolvable:$true] %s154_s4 }
  0x18   : > { %s140_s6 = scalar_lea.sflag [#allocation4], %s139_s25  ;;  %s1495_s7 = smov 128  }
  0x19   : > { %s1496_s8 = smov 8   ;;  %p162_p2 = scmp.lt.s32.totalorder %s1493_s14, 3 }
  0x1b   : > { %s151_s30 = scalar_lea.hbm %s2484_s0, %s1237_s27  ;;  %p163_p3 = pnand %p1229_p1, %p162_p2 }
  0x1c   : > { %s152_s5 = sshll.u32 %s151_s30, 4  ;;  %s153_s5 = int_to_ptr.hbm [resolvable:$true] %s152_s5 }
  0x1d   : > { %1318 = dma.hbm_to_vmem [thread:$0]  (!%p1316_p0), %s153_s5, 1024, %s155_s4, %s140_s6, %s1495_s7, %s1495_s7, %s1496_s8  }
  0x1e   : > { %166 = sbr.rel (%p163_p3) target bundleno = 482 (0x1e2), region = 28 }
  0x23   : > { %s1592_s15 = sand.u32 1, %s1477_s10  }
  0x24   : > { %s2444_s16 = sshll.u32 %s1592_s15, 6  ;;  %s169_s18 = scalar_lea.sflag [#allocation4], %s1592_s15 }
  0x25   : > { %s172_s19 = scalar_lea.vmem [#allocation3], %s2444_s16 }
  0x26   : > { %1464 = dma.done.wait (%p1565_p8), %s169_s18, 1024  }
  0x27   : > { %1466 = vsyncadd (%p1565_p8), %s169_s18, 4294966272  ;;  %v248_v0 = vld [vmem:[%s172_s19 + $0x20] sm:$0xff]  ;;  %v246_v1 = vld [vmem:[%s172_s19 + $0x10] sm:$0xff]  ;;  %s1497_s20 = smov 1   ;;  %s2485_s1 = sld [smem:[#allocation27_spill]]  ;;  %vm207_vm0 = vcmask 139264  }
  0x28   : > { %v244_v2 = vld [vmem:[%s172_s19] sm:$0xff]  ;;  %268 = vrot.lane.b32.xlu2 %v248_v0, %s1497_s20  ;;  %264 = vrot.lane.b32.xlu1 %v246_v1, %s1497_s20  ;;  %v249_v7 = vld [vmem:[%s172_s19 + $0x28] sm:$0xff]  ;;  %s1498_s4 = smov 127   ;;  %s1499_s5 = smov 126   ;;  %vm216_vm1 = vcmask 7168   ;;  %vm230_vm2 = vcmask 146568  }
  0x29   : > { %260 = vrot.lane.b32.xlu0 %v244_v2, %s1497_s20  ;;  %v247_v8 = vld [vmem:[%s172_s19 + $0x18] sm:$0xff]  ;;  %v245_v9 = vld [vmem:[%s172_s19 + $0x8] sm:$0xff]  ;;  %v250_v11 = vld [vmem:[%s172_s19 + $0x30] sm:$0xff]  ;;  %v1500_v16 = vmov 0.0   ;;  %vm219_vm3 = vcmask 1024   ;;  %vm233_vm4 = vcmask 140424  }
  0x2a   : > { %v251_v10 = vld [vmem:[%s172_s19 + $0x38] sm:$0xff]  ;;  %210 = vst.msk [vmem:[#allocation2 + $0x30] sm:$0x1] %vm207_vm0, %v1500_v16  ;;  %vm284_vm5 = vcmask 138248   ;;  %vm449_vm6 = vcmask 1046528   ;;  %vm630_vm7 = vcmask 1045504  }
  0x2b   : > { %224 = vst.msk [vmem:[#allocation2 + $0x30] sm:$0xff] %vm216_vm1, %v1500_v16  ;;  %vm779_vm8 = vcmask 130048  }
  0x2c   : > { %225 = vst.msk [vmem:[#allocation2 + $0x38] sm:$0xff] %vm216_vm1, %v1500_v16 }
  0x2d   : > { %v293_v3 = vld [vmem:[%s2485_s1] sm:$0x7]  ;;  %v294_v4 = vld [vmem:[%s2485_s1 + $0x4] sm:$0x7]  ;;  %v295_v5 = vld [vmem:[%s2485_s1 + $0x8] sm:$0x7] }
  0x2e   : > { %1239 = vpush %v293_v3  ;;  %v1614_v6 = vld [vmem:[%s2485_s1 + $0xc] sm:$0x7]  ;;  %v1625_v12 = vrot.slane %v293_v3, 1  ;;  %v1627_v13 = vrot.slane %v295_v5, 1  ;;  %v1635_v14 = vrot.slane %v294_v4, 1  ;;  %v1662_v17 = vrot.slane %v294_v4, 2 }
  0x2f   : > { %1241 = vpush %v294_v4  ;;  %v1638_v15 = vrot.slane %v1614_v6, 1  ;;  %v1665_v18 = vrot.slane %v293_v3, 2  ;;  %v1668_v19 = vrot.slane %v295_v5, 2  ;;  %v1684_v20 = vrot.slane %v1614_v6, 2 }
  0x30   : > { %1243 = vpush %v295_v5  ;;  %270 = vrot.lane.b32.xlu2 %v249_v7, %s1497_s20  ;;  %266 = vrot.lane.b32.xlu1 %v247_v8, %s1497_s20 }
  0x31   : > { %1245 = vpush %v1614_v6  ;;  %262 = vrot.lane.b32.xlu0 %v245_v9, %s1497_s20 }
  0x32   : > { %238 = vst.msk [vmem:[#allocation2 + $0x30] sm:$0xff] %vm230_vm2, %v1500_v16 }
  0x33   : > { %239 = vst.msk [vmem:[#allocation2 + $0x38] sm:$0xff] %vm230_vm2, %v1500_v16 }
  0x34   : > { %208 = vst.msk [vmem:[#allocation2] sm:$0x1] %vm207_vm0, %v1500_v16 }
  0x35   : > { %209 = vst.msk [vmem:[#allocation2 + $0x18] sm:$0x1] %vm207_vm0, %v1500_v16 }
  0x36   : > { %211 = vst.msk [vmem:[#allocation2 + $0x48] sm:$0x1] %vm207_vm0, %v1500_v16 }
  0x37   : > { %212 = vst.msk [vmem:[#allocation2 + $0x11] sm:$0x1] %vm207_vm0, %v1500_v16 }
  0x38   : > { %329 = vrot.lane.b32.xlu2 %v293_v3, %s1498_s4  ;;  %274 = vrot.lane.b32.xlu1 %v251_v10, %s1497_s20  ;;  %213 = vst.msk [vmem:[#allocation2 + $0x29] sm:$0x1] %vm207_vm0, %v1500_v16 }
  0x39   : > { %272 = vrot.lane.b32.xlu0 %v250_v11, %s1497_s20  ;;  %214 = vst.msk [vmem:[#allocation2 + $0x41] sm:$0x1] %vm207_vm0, %v1500_v16 }
  0x3a   : > { %215 = vst.msk [vmem:[#allocation2 + $0x59] sm:$0x1] %vm207_vm0, %v1500_v16 }
  0x3b   : > { %218 = vst.msk [vmem:[#allocation2 + $0x8] sm:$0xff] %vm216_vm1, %v1500_v16 }
  0x3c   : > { %222 = vst.msk [vmem:[#allocation2 + $0x20] sm:$0xff] %vm216_vm1, %v1500_v16 }
  0x3d   : > { %228 = vst.msk [vmem:[#allocation2 + $0x50] sm:$0xff] %vm216_vm1, %v1500_v16 }
  0x3e   : > { %217 = vst.msk [vmem:[#allocation2] sm:$0xff] %vm216_vm1, %v1500_v16 }
  0x3f   : > { %221 = vst.msk [vmem:[#allocation2 + $0x18] sm:$0xff] %vm216_vm1, %v1500_v16 }
  0x40   : > { %333 = vrot.lane.b32.xlu1 %v295_v5, %s1498_s4  ;;  %335 = vrot.lane.b32.xlu2 %v1614_v6, %s1498_s4  ;;  %227 = vst.msk [vmem:[#allocation2 + $0x48] sm:$0xff] %vm216_vm1, %v1500_v16 }
  0x41   : > { %331 = vrot.lane.b32.xlu0 %v294_v4, %s1498_s4  ;;  %232 = vst.msk [vmem:[#allocation2 + $0x8] sm:$0xff] %vm230_vm2, %v1500_v16 }
  0x42   : > { %236 = vst.msk [vmem:[#allocation2 + $0x20] sm:$0xff] %vm230_vm2, %v1500_v16 }
  0x43   : > { %242 = vst.msk [vmem:[#allocation2 + $0x50] sm:$0xff] %vm230_vm2, %v1500_v16 }
  0x44   : > { %226 = vst.msk [vmem:[#allocation2 + $0x40] sm:$0x3] %vm219_vm3, %v1500_v16 }
  0x45   : > { %240 = vst.msk [vmem:[#allocation2 + $0x40] sm:$0x3] %vm233_vm4, %v1500_v16 }
  0x46   : > { %220 = vst.msk [vmem:[#allocation2 + $0x10] sm:$0x3] %vm219_vm3, %v1500_v16 }
  0x47   : > { %223 = vst.msk [vmem:[#allocation2 + $0x28] sm:$0x3] %vm219_vm3, %v1500_v16 }
  0x48   : > { %373 = vrot.lane.b32.xlu1 %v293_v3, %s1499_s5  ;;  %375 = vrot.lane.b32.xlu2 %v294_v4, %s1499_s5  ;;  %229 = vst.msk [vmem:[#allocation2 + $0x58] sm:$0x3] %vm219_vm3, %v1500_v16 }
  0x49   : > { %377 = vrot.lane.b32.xlu0 %v295_v5, %s1499_s5  ;;  %231 = vst.msk [vmem:[#allocation2] sm:$0xff] %vm230_vm2, %v1500_v16 }
  0x4a   : > { %235 = vst.msk [vmem:[#allocation2 + $0x18] sm:$0xff] %vm230_vm2, %v1500_v16 }
  0x4b   : > { %241 = vst.msk [vmem:[#allocation2 + $0x48] sm:$0xff] %vm230_vm2, %v1500_v16 }
  0x4c   : > { %234 = vst.msk [vmem:[#allocation2 + $0x10] sm:$0x3] %vm233_vm4, %v1500_v16 }
  0x4d   : > { %237 = vst.msk [vmem:[#allocation2 + $0x28] sm:$0x3] %vm233_vm4, %v1500_v16 }
  0x4e   : > { %243 = vst.msk [vmem:[#allocation2 + $0x58] sm:$0x3] %vm233_vm4, %v1500_v16 }
  0x50   : > { %379 = vrot.lane.b32.xlu1 %v1614_v6, %s1499_s5  ;;  %474 = vrot.lane.b32.xlu2 %v1627_v13, %s1498_s4 }
  0x51   : > { %470 = vrot.lane.b32.xlu0 %v1625_v12, %s1498_s4 }
  0x58   : > { %472 = vrot.lane.b32.xlu1 %v1635_v14, %s1498_s4  ;;  %534 = vrot.lane.b32.xlu2 %v1625_v12, %s1499_s5 }
  0x59   : > { %476 = vrot.lane.b32.xlu0 %v1638_v15, %s1498_s4 }
  0x5f   : > { %s1713_s6 = spop %1239 }
  0x60   : > { %538 = vrot.lane.b32.xlu1 %v1627_v13, %s1499_s5  ;;  %540 = vrot.lane.b32.xlu2 %v1638_v15, %s1499_s5  ;;  %s1715_s7 = spop %1241 }
  0x61   : > { %536 = vrot.lane.b32.xlu0 %v1635_v14, %s1499_s5  ;;  %s1717_s8 = spop %1243 }
  0x62   : > { %s1719_s18 = spop %1245 }
  0x68   : > { %653 = vrot.lane.b32.xlu1 %v1662_v17, %s1498_s4  ;;  %655 = vrot.lane.b32.xlu2 %v1668_v19, %s1498_s4 }
  0x69   : > { %651 = vrot.lane.b32.xlu0 %v1665_v18, %s1498_s4 }
  0x70   : > { %715 = vrot.lane.b32.xlu1 %v1665_v18, %s1499_s5  ;;  %717 = vrot.lane.b32.xlu2 %v1662_v17, %s1499_s5 }
  0x71   : > { %657 = vrot.lane.b32.xlu0 %v1684_v20, %s1498_s4 }
  0x78   : > { %721 = vrot.lane.b32.xlu1 %v1684_v20, %s1499_s5 }
  0x79   : > { %719 = vrot.lane.b32.xlu0 %v1668_v19, %s1499_s5 }
  0x82   : > { %v269_v21 = vpop.permute.xlu2 %268 }
  0x83   : > { %289 = vst.msk [vmem:[#allocation2 + $0x31] sm:$0xff] %vm284_vm5, %v269_v21 }
  0x8a   : > { %v271_v22 = vpop.permute.xlu2 %270  ;;  %v1745_v56 = vld [vmem:[#allocation2 + $0x30] sm:$0xff] }
  0x8b   : > { %290 = vst.msk [vmem:[#allocation2 + $0x39] sm:$0xff] %vm284_vm5, %v271_v22 }
  0x92   : > { %v330_v23 = vpop.permute.xlu2 %329  ;;  %v1787_v11 = vld [vmem:[#allocation2 + $0x38] sm:$0xff] }
  0x93   : > { %1247 = vpush %v330_v23 }
  0x94   : > { %2487 = vst [vmem:[#allocation10_spill] sm:$0xff] %v1787_v11 }
  0x9a   : > { %v265_v24 = vpop.permute.xlu1 %264  ;;  %v336_v28 = vpop.permute.xlu2 %335 }
  0x9b   : > { %287 = vst.msk [vmem:[#allocation2 + $0x19] sm:$0xff] %vm284_vm5, %v265_v24  ;;  %v261_v25 = vpop.permute.xlu0 %260  ;;  %v1818_v24 = vld [vmem:[#allocation2 + $0x38] sm:$0x3] }
  0x9c   : > { %285 = vst.msk [vmem:[#allocation2 + $0x1] sm:$0xff] %vm284_vm5, %v261_v25  ;;  %v1820_v25 = vld [vmem:[#allocation2 + $0x40] sm:$0x3] }
  0x9d   : > { %2490 = vst [vmem:[#allocation13_spill] sm:$0xff] %v1820_v25 }
  0xa2   : > { %v267_v26 = vpop.permute.xlu1 %266  ;;  %v376_v31 = vpop.permute.xlu2 %375  ;;  %v1740_v54 = vld [vmem:[#allocation2 + $0x18] sm:$0xff] }
  0xa3   : > { %288 = vst.msk [vmem:[#allocation2 + $0x21] sm:$0xff] %vm284_vm5, %v267_v26  ;;  %v263_v27 = vpop.permute.xlu0 %262  ;;  %v1724_v39 = vld [vmem:[#allocation2] sm:$0xff] }
  0xa4   : > { %286 = vst.msk [vmem:[#allocation2 + $0x9] sm:$0xff] %vm284_vm5, %v263_v27 }
  0xa5   : > { %2486 = vst [vmem:[#allocation9_spill] sm:$0xff] %v1724_v39 }
  0xaa   : > { %v275_v29 = vpop.permute.xlu1 %274  ;;  %v475_v36 = vpop.permute.xlu2 %474 }
  0xab   : > { %292 = vst.msk [vmem:[#allocation2 + $0x51] sm:$0xff] %vm284_vm5, %v275_v29  ;;  %v273_v30 = vpop.permute.xlu0 %272  ;;  %v1781_v8 = vld [vmem:[#allocation2 + $0x8] sm:$0x3]  ;;  %v1785_v10 = vld [vmem:[#allocation2 + $0x10] sm:$0x3] }
  0xac   : > { %291 = vst.msk [vmem:[#allocation2 + $0x49] sm:$0xff] %vm284_vm5, %v273_v30 }
  0xb2   : > { %v334_v32 = vpop.permute.xlu1 %333  ;;  %v535_v41 = vpop.permute.xlu2 %534  ;;  %v1837_v30 = vld [vmem:[#allocation2 + $0x58] sm:$0x3] }
  0xb3   : > { %v332_v33 = vpop.permute.xlu0 %331  ;;  %v1751_v59 = vld [vmem:[#allocation2 + $0x48] sm:$0xff]  ;;  %2491 = vst [vmem:[#allocation14_spill] sm:$0xff] %v1837_v30 }
  0xb4   : > { %1249 = vpush %v332_v33  ;;  %v1849_v33 = vld [vmem:[#allocation2 + $0x8] sm:$0xff] }
  0xb5   : > { %1251 = vpush %v334_v32 }
  0xb6   : > { %1253 = vpush %v336_v28  ;;  %v1833_v28 = vld [vmem:[#allocation2 + $0x50] sm:$0x3] }
  0xba   : > { %v374_v34 = vpop.permute.xlu1 %373  ;;  %v541_v45 = vpop.permute.xlu2 %540 }
  0xbb   : > { %v378_v35 = vpop.permute.xlu0 %377  ;;  %1255 = vpush %v374_v34 }
  0xbc   : > { %1257 = vpush %v376_v31 }
  0xbd   : > { %1259 = vpush %v378_v35 }
  0xc2   : > { %v380_v37 = vpop.permute.xlu1 %379  ;;  %v656_v48 = vpop.permute.xlu2 %655 }
  0xc3   : > { %v471_v38 = vpop.permute.xlu0 %470  ;;  %1261 = vpush %v380_v37  ;;  %v1865_v37 = vld [vmem:[#allocation2 + $0x50] sm:$0xff] }
  0xc4   : > { %1263 = vpush %v1625_v12  ;;  %s1722_s19 = spop %1247 }
  0xc5   : > { %1265 = vpush %v1635_v14  ;;  %v338_v40 = vstv %s1722_s19 }
  0xc6   : > { %1267 = vpush %v1627_v13  ;;  %v349_v42 = vmul.f32 %v338_v40, %v1724_v39  ;;  %v800_v35 = vmul.f32 %v1849_v33, %v338_v40 }
  0xc7   : > { %1269 = vpush %v1638_v15 }
  0xc8   : > { %1271 = vpush %v471_v38  ;;  %357 = vrot.lane.b32.xlu0 %v349_v42, %s1498_s4 }
  0xc9   : > { %2492 = vst [vmem:[#allocation15_spill] sm:$0xff] %v1865_v37 }
  0xca   : > { %v473_v43 = vpop.permute.xlu1 %472  ;;  %v718_v52 = vpop.permute.xlu2 %717 }
  0xcb   : > { %v477_v44 = vpop.permute.xlu0 %476  ;;  %1273 = vpush %v473_v43 }
  0xcc   : > { %1275 = vpush %v475_v36 }
  0xcd   : > { %1277 = vpush %v477_v44 }
  0xce   : > { %1279 = vpush %v535_v41 }
  0xd2   : > { %v539_v46 = vpop.permute.xlu1 %538 }
  0xd3   : > { %v537_v47 = vpop.permute.xlu0 %536 }
  0xd4   : > { %1281 = vpush %v537_v47 }
  0xd5   : > { %1283 = vpush %v539_v46 }
  0xd6   : > { %1285 = vpush %v541_v45 }
  0xd7   : > { %1287 = vpush %v1665_v18  ;;  %v1803_v18 = vld [vmem:[#allocation2 + $0x20] sm:$0xff] }
  0xd8   : > { %1289 = vpush %v1662_v17 }
  0xd9   : > { %1291 = vpush %v1668_v19  ;;  %v1805_v19 = vld [vmem:[#allocation2 + $0x20] sm:$0x3] }
  0xda   : > { %1293 = vpush %v1684_v20  ;;  %v654_v49 = vpop.permute.xlu1 %653  ;;  %v1807_v20 = vld [vmem:[#allocation2 + $0x28] sm:$0x3] }
  0xdb   : > { %v652_v50 = vpop.permute.xlu0 %651  ;;  %2488 = vst [vmem:[#allocation11_spill] sm:$0xff] %v1803_v18 }
  0xdc   : > { %1295 = vpush %v652_v50 }
  0xdd   : > { %1297 = vpush %v654_v49 }
  0xde   : > { %1299 = vpush %v656_v48 }
  0xdf   : > { %2489 = vst [vmem:[#allocation12_spill] sm:$0xff] %v1807_v20 }
  0xe2   : > { %v716_v51 = vpop.permute.xlu1 %715 }
  0xe3   : > { %v658_v53 = vpop.permute.xlu0 %657 }
  0xe4   : > { %1301 = vpush %v658_v53 }
  0xe5   : > { %1303 = vpush %v716_v51  ;;  %s1738_s20 = spop %1249 }
  0xe6   : > { %1305 = vpush %v718_v52  ;;  %v341_v55 = vstv %s1738_s20  ;;  %s1743_s25 = spop %1251 }
  0xe7   : > { %v350_v57 = vmul.f32 %v341_v55, %v1740_v54  ;;  %v344_v58 = vstv %s1743_s25  ;;  %s1749_s26 = spop %1253  ;;  %v801_v21 = vmul.f32 %v1803_v18, %v341_v55 }
  0xe8   : > { %v351_v60 = vmul.f32 %v344_v58, %v1745_v56  ;;  %v347_v61 = vstv %s1749_s26  ;;  %v802_v15 = vmul.f32 %v1787_v11, %v344_v58 }
  0xe9   : > { %v352_v62 = vmul.f32 %v347_v61, %v1751_v59  ;;  %359 = vrot.lane.b32.xlu1 %v350_v57, %s1498_s4  ;;  %v803_v38 = vmul.f32 %v1865_v37, %v347_v61 }
  0xea   : > { %361 = vrot.lane.b32.xlu2 %v351_v60, %s1498_s4  ;;  %v722_v63 = vpop.permute.xlu1 %721 }
  0xeb   : > { %363 = vrot.lane.b32.xlu0 %v352_v62, %s1498_s4  ;;  %v720_v0 = vpop.permute.xlu0 %719 }
  0xec   : > { %1307 = vpush %v720_v0  ;;  %s1761_s27 = spop %1255 }
  0xed   : > { %1309 = vpush %v722_v63  ;;  %v382_v1 = vstv %s1761_s27  ;;  %s1764_s28 = spop %1257 }
  0xee   : > { %v393_v2 = vmul.f32 %v382_v1, %v1724_v39  ;;  %v385_v3 = vstv %s1764_s28  ;;  %s1768_s29 = spop %1259  ;;  %v824_v36 = vmul.f32 %v1849_v33, %v382_v1 }
  0xef   : > { %v394_v4 = vmul.f32 %v385_v3, %v1740_v54  ;;  %v388_v5 = vstv %s1768_s29  ;;  %v825_v34 = vmul.f32 %v1803_v18, %v385_v3 }
  0xf0   : > { %v395_v6 = vmul.f32 %v388_v5, %v1745_v56  ;;  %v826_v43 = vmul.f32 %v1787_v11, %v388_v5 }
  0xf2   : > { %405 = vrot.lane.b32.xlu1 %v395_v6, %s1499_s5  ;;  %401 = vrot.lane.b32.xlu2 %v393_v2, %s1499_s5 }
  0xf3   : > { %403 = vrot.lane.b32.xlu0 %v394_v4, %s1499_s5 }
  0xf4   : > { %s1778_s30 = spop %1261 }
  0xf5   : > { %v391_v7 = vstv %s1778_s30  ;;  %s1264_s21 = spop %1263 }
  0xf6   : > { %v1783_v9 = vstv %s1264_s21  ;;  %s1266_s3 = spop %1265  ;;  %v396_v12 = vmul.f32 %v391_v7, %v1751_v59  ;;  %v827_v40 = vmul.f32 %v1865_v37, %v391_v7 }
  0xf7   : > { %v1792_v13 = vmul.f32 %v1783_v9, %v1781_v8  ;;  %v1796_v14 = vmul.f32 %v1785_v10, %v1783_v9  ;;  %s1268_s20 = spop %1267  ;;  %v1799_v16 = vstv %s1266_s3  ;;  %v1903_v50 = vmul.f32 %v1783_v9, %v1724_v39 }
  0xf8   : > { %v1801_v17 = vstv %s1268_s20  ;;  %v1812_v22 = vmul.f32 %v1799_v16, %v1805_v19  ;;  %v1816_v23 = vmul.f32 %v1807_v20, %v1799_v16  ;;  %s1270_s25 = spop %1269  ;;  %v1928_v62 = vmul.f32 %v1849_v33, %v1783_v9 }
  0xf9   : > { %v1825_v26 = vmul.f32 %v1801_v17, %v1818_v24  ;;  %v1829_v27 = vmul.f32 %v1820_v25, %v1801_v17  ;;  %v1835_v29 = vstv %s1270_s25  ;;  %s1272_s27 = spop %1271  ;;  %v1937_v2 = vmul.f32 %v1799_v16, %v1740_v54 }
  0xfa   : > { %812 = vrot.lane.b32.xlu1 %v802_v15, %s1498_s4  ;;  %407 = vrot.lane.b32.xlu2 %v396_v12, %s1499_s5  ;;  %v1841_v31 = vmul.f32 %v1835_v29, %v1833_v28  ;;  %v1845_v32 = vmul.f32 %v1837_v30, %v1835_v29  ;;  %v1877_v41 = vstv %s1272_s27  ;;  %v1941_v3 = vmul.f32 %v1803_v18, %v1799_v16 }
  0xfb   : > { %810 = vrot.lane.b32.xlu0 %v801_v21, %s1498_s4  ;;  %v490_v44 = vmul.f32 %v1877_v41, %v1724_v39  ;;  %v491_v45 = vmul.f32 %v1877_v41, %v1781_v8  ;;  %v1956_v15 = vmul.f32 %v1801_v17, %v1745_v56  ;;  %v1991_v12 = vmul.f32 %v1835_v29, %v1751_v59 }
  0xfc   : > { %s1847_s28 = spop %1273 }
  0xfd   : > { %s1276_s30 = spop %1275  ;;  %v506_v52 = vrot.slane %v490_v44, 1  ;;  %v507_v53 = vrot.slane %v491_v45, 1  ;;  %v1944_v4 = vstv %s1847_s28 }
  0xfe   : > { %s1857_s21 = spop %1277  ;;  %v1905_v51 = vstv %s1276_s30  ;;  %2495 = vst [vmem:[#allocation18_spill] sm:$0xff] %v1944_v4  ;;  %v492_v44 = vmul.f32 %v1944_v4, %v1740_v54  ;;  %v493_v45 = vmul.f32 %v1944_v4, %v1805_v19 }
  0xff   : > { %s1861_s3 = spop %1279  ;;  %2493 = vst [vmem:[#allocation16_spill] sm:$0xff] %v1905_v51  ;;  %v1916_v58 = vstv %s1857_s21  ;;  %v494_v63 = vmul.f32 %v1905_v51, %v1745_v56  ;;  %v495_v0 = vmul.f32 %v1905_v51, %v1818_v24  ;;  %v508_v9 = vsel %vm449_vm6, %v506_v52, %v507_v53 }
 0x100   : > { %2494 = vst [vmem:[#allocation17_spill] sm:$0xff] %v1916_v58  ;;  %v496_v5 = vmul.f32 %v1916_v58, %v1751_v59  ;;  %v497_v6 = vmul.f32 %v1916_v58, %v1833_v28 }
 0x102   : > { %834 = vrot.lane.b32.xlu1 %v825_v34, %s1499_s5  ;;  %808 = vrot.lane.b32.xlu2 %v800_v35, %s1498_s4  ;;  %v1983_v35 = vstv %s1861_s3 }
 0x103   : > { %832 = vrot.lane.b32.xlu0 %v824_v36, %s1499_s5  ;;  %v512_v36 = vrot.slane %v494_v63, 1  ;;  %v515_v63 = vrot.slane %v496_v5, 1  ;;  %2496 = vst [vmem:[#allocation19_spill] sm:$0xff] %v1983_v35  ;;  %v1999_v5 = vmul.f32 %v1865_v37, %v1835_v29  ;;  %v2007_v1 = vmul.f32 %v1983_v35, %v1724_v39 }
 0x105   : > { %s1863_s20 = spop %1281 }
 0x106   : > { %s1867_s19 = spop %1283 }
 0x107   : > { %s1873_s25 = spop %1285 }
 0x108   : > { %s1288_s16 = spop %1287  ;;  %v2002_v34 = vstv %s1873_s25 }
 0x109   : > { %s1290_s0 = spop %1289  ;;  %v1879_v42 = vstv %s1288_s16  ;;  %2499 = vst [vmem:[#allocation22_spill] sm:$0xff] %v2002_v34 }
 0x10a   : > { %814 = vrot.lane.b32.xlu2 %v803_v38, %s1498_s4  ;;  %s1292_s1 = spop %1291  ;;  %v1890_v46 = vmul.f32 %v1879_v42, %v1781_v8  ;;  %v1894_v47 = vmul.f32 %v1785_v10, %v1879_v42  ;;  %v1896_v48 = vstv %s1290_s0  ;;  %518 = vrot.lane.b32.xlu1 %v508_v9, %s1498_s4  ;;  %v513_v38 = vrot.slane %v495_v0, 1 }
 0x10b   : > { %838 = vrot.lane.b32.xlu0 %v827_v40, %s1499_s5  ;;  %v1898_v49 = vstv %s1292_s1  ;;  %v1909_v55 = vmul.f32 %v1896_v48, %v1805_v19  ;;  %v1913_v57 = vmul.f32 %v1807_v20, %v1896_v48  ;;  %s1294_s0 = spop %1293  ;;  %v516_v9 = vrot.slane %v497_v6, 1 }
 0x10c   : > { %v1920_v60 = vmul.f32 %v1898_v49, %v1818_v24  ;;  %v1924_v61 = vmul.f32 %v1820_v25, %v1898_v49  ;;  %v1950_v7 = vstv %s1294_s0  ;;  %v1994_v40 = vstv %s1863_s20 }
 0x10d   : > { %v1960_v16 = vmul.f32 %v1950_v7, %v1833_v28  ;;  %v1964_v21 = vmul.f32 %v1837_v30, %v1950_v7  ;;  %2498 = vst [vmem:[#allocation21_spill] sm:$0xff] %v1994_v40  ;;  %v514_v53 = vsel %vm449_vm6, %v512_v36, %v513_v38  ;;  %v509_v6 = vrot.slane %v492_v44, 1  ;;  %s1296_s1 = spop %1295 }
 0x10e   : > { %v510_v0 = vrot.slane %v493_v45, 1  ;;  %v517_v29 = vsel %vm449_vm6, %v515_v63, %v516_v9  ;;  %v556_v45 = vmul.f32 %v1994_v40, %v1740_v54  ;;  %v2027_v63 = vmul.f32 %v2002_v34, %v1751_v59  ;;  %s1298_s16 = spop %1297 }
 0x10f   : > { %v2033_v44 = vmul.f32 %v2002_v34, %v1833_v28  ;;  %v570_v30 = vrot.slane %v2007_v1, 1  ;;  %v2043_v9 = vmul.f32 %v1849_v33, %v1879_v42  ;;  %v2045_v38 = vstv %s1298_s16  ;;  %s2047_s26 = spop %1299  ;;  %s1431_s16 = scalar_lea.hbm %s2443_s2, 128 }
 0x110   : > { %v573_v20 = vrot.slane %v556_v45, 1  ;;  %2500 = vst [vmem:[#allocation23_spill] sm:$0xff] %v2045_v38  ;;  %v2053_v1 = vmul.f32 %v1896_v48, %v1740_v54  ;;  %v674_v45 = vmul.f32 %v2045_v38, %v1805_v19  ;;  %v989_v25 = vrot.slane %v1894_v47, 2 }
 0x111   : > { %v620_v47 = vmul.f32 %v1950_v7, %v1751_v59 }
 0x112   : > { %836 = vrot.lane.b32.xlu2 %v826_v43, %s1499_s5  ;;  %v1972_v43 = vmul.f32 %v1787_v11, %v1801_v17  ;;  %v1986_v17 = vstv %s1867_s19  ;;  %524 = vrot.lane.b32.xlu1 %v517_v29, %s1498_s4  ;;  %v2037_v29 = vmul.f32 %v1879_v42, %v1724_v39 }
 0x113   : > { %2497 = vst [vmem:[#allocation20_spill] sm:$0xff] %v1986_v17  ;;  %522 = vrot.lane.b32.xlu0 %v514_v53, %s1498_s4  ;;  %v558_v52 = vmul.f32 %v1986_v17, %v1745_v56  ;;  %v559_v36 = vmul.f32 %v1986_v17, %v1818_v24  ;;  %v557_v53 = vmul.f32 %v1994_v40, %v1805_v19 }
 0x114   : > { %v555_v17 = vmul.f32 %v1983_v35, %v1781_v8  ;;  %v511_v40 = vsel %vm449_vm6, %v509_v6, %v510_v0  ;;  %v580_v0 = vrot.slane %v2033_v44, 1 }
 0x115   : > { %v576_v58 = vrot.slane %v558_v52, 1  ;;  %v577_v35 = vrot.slane %v559_v36, 1  ;;  %v574_v4 = vrot.slane %v557_v53, 1  ;;  %v2055_v52 = vstv %s1296_s1  ;;  %s1302_s29 = spop %1301 }
 0x116   : > { %v571_v34 = vrot.slane %v555_v17, 1  ;;  %2501 = vst [vmem:[#allocation24_spill] sm:$0xff] %v2055_v52  ;;  %v2062_v36 = vmul.f32 %v1803_v18, %v1896_v48  ;;  %v673_v17 = vmul.f32 %v2045_v38, %v1740_v54  ;;  %s1304_s27 = spop %1303  ;;  %v671_v42 = vmul.f32 %v2055_v52, %v1724_v39 }
 0x117   : > { %v578_v44 = vsel %vm449_vm6, %v576_v58, %v577_v35  ;;  %v672_v48 = vmul.f32 %v2055_v52, %v1781_v8  ;;  %v575_v6 = vsel %vm449_vm6, %v573_v20, %v574_v4  ;;  %v634_v38 = vrot.slane %v2053_v1, 2  ;;  %s2100_s28 = spop %1305 }
 0x118   : > { %v635_v18 = vrot.slane %v1909_v55, 2  ;;  %v976_v58 = vmul.f32 %v1787_v11, %v1898_v49  ;;  %v991_v35 = vrot.slane %v2062_v36, 2  ;;  %v992_v53 = vrot.slane %v1913_v57, 2 }
 0x119   : > { %v2088_v52 = vstv %s1302_s29  ;;  %v690_v4 = vrot.slane %v673_v17, 2  ;;  %v691_v55 = vrot.slane %v674_v45, 2  ;;  %v687_v1 = vrot.slane %v671_v42, 2 }
 0x11a   : > { %520 = vrot.lane.b32.xlu2 %v511_v40, %s1498_s4  ;;  %v2066_v40 = vmul.f32 %v1898_v49, %v1745_v56  ;;  %586 = vrot.lane.b32.xlu1 %v578_v44, %s1499_s5  ;;  %2502 = vst [vmem:[#allocation25_spill] sm:$0xff] %v2088_v52  ;;  %v2090_v44 = vstv %s1304_s27  ;;  %v978_v49 = vmul.f32 %v1865_v37, %v1950_v7  ;;  %v2098_v11 = vstv %s2047_s26 }
 0x11b   : > { %584 = vrot.lane.b32.xlu0 %v575_v6, %s1499_s5  ;;  %v688_v6 = vrot.slane %v672_v48, 2  ;;  %v677_v57 = vmul.f32 %v2088_v52, %v1751_v59  ;;  %v678_v36 = vmul.f32 %v2088_v52, %v1833_v28  ;;  %v572_v17 = vsel %vm449_vm6, %v570_v30, %v571_v34 }
 0x11c   : > { %v637_v20 = vrot.slane %v2066_v40, 2  ;;  %v735_v40 = vmul.f32 %v2090_v44, %v1724_v39  ;;  %v638_v7 = vrot.slane %v1920_v60, 2  ;;  %v994_v42 = vrot.slane %v976_v58, 2 }
 0x11d   : > { %s1308_s30 = spop %1307  ;;  %v736_v45 = vmul.f32 %v2090_v44, %v1781_v8  ;;  %v995_v48 = vrot.slane %v1924_v61, 2  ;;  %v640_v37 = vrot.slane %v620_v47, 2  ;;  %v641_v52 = vrot.slane %v1960_v16, 2 }
 0x11e   : > { %s1310_s21 = spop %1309  ;;  %v692_v39 = vsel %vm630_vm7, %v690_v4, %v691_v55  ;;  %v997_v51 = vrot.slane %v978_v49, 2  ;;  %v998_v30 = vrot.slane %v1964_v21, 2  ;;  %v675_v60 = vmul.f32 %v2098_v11, %v1745_v56 }
 0x11f   : > { %v689_v8 = vsel %vm630_vm7, %v687_v1, %v688_v6  ;;  %v676_v34 = vmul.f32 %v2098_v11, %v1818_v24  ;;  %v696_v61 = vrot.slane %v677_v57, 2  ;;  %v697_v58 = vrot.slane %v678_v36, 2 }
 0x120   : > { %v751_v47 = vrot.slane %v735_v40, 2  ;;  %v752_v16 = vrot.slane %v736_v45, 2  ;;  %v2124_v4 = vstv %s1308_s30  ;;  %v2126_v55 = vstv %s1310_s21 }
 0x121   : > { %v2503_v21 = vrot.slane %v2027_v63, 1  ;;  %v2505_v1 = vrot.slane %v1937_v2, 1  ;;  %v2506_v57 = vrot.slane %v1792_v13, 1  ;;  %v2507_v36 = vrot.slane %v1903_v50, 1 }
 0x122   : > { %582 = vrot.lane.b32.xlu2 %v572_v17, %s1499_s5  ;;  %701 = vrot.lane.b32.xlu1 %v692_v39, %s1498_s4  ;;  %v2504_v39 = vrot.slane %v1812_v22, 1  ;;  %v2508_v17 = vrot.slane %v1841_v31, 1  ;;  %v2509_v63 = vrot.slane %v1991_v12, 1  ;;  %v2510_v22 = vrot.slane %v1825_v26, 1 }
 0x123   : > { %699 = vrot.lane.b32.xlu0 %v689_v8, %s1498_s4  ;;  %v581_v49 = vsel %vm449_vm6, %v2503_v21, %v580_v0  ;;  %v2143_v40 = vsel %vm449_vm6, %v2507_v36, %v2506_v57  ;;  %v2511_v2 = vrot.slane %v1956_v15, 1  ;;  %v2160_v13 = vsel %vm630_vm7, %v637_v20, %v638_v7  ;;  %v2523_v57 = vld [vmem:[#allocation16_spill] sm:$0xff]  ;;  %v2524_v36 = vld [vmem:[#allocation10_spill] sm:$0xff] }
 0x124   : > { %v2136_v6 = vsel %vm449_vm6, %v2505_v1, %v2504_v39  ;;  %v2150_v0 = vsel %vm449_vm6, %v2509_v63, %v2508_v17  ;;  %v2163_v50 = vsel %vm630_vm7, %v634_v38, %v635_v18  ;;  %v2512_v31 = vrot.slane %v1890_v46, 2  ;;  %v2525_v63 = vld [vmem:[#allocation13_spill] sm:$0xff] }
 0x125   : > { %v2157_v45 = vsel %vm449_vm6, %v2511_v2, %v2510_v22  ;;  %v2513_v12 = vrot.slane %v2037_v29, 2  ;;  %v2514_v26 = vrot.slane %v1816_v23, 1  ;;  %v2515_v15 = vrot.slane %v1941_v3, 1 }
 0x126   : > { %v2180_v20 = vsel %vm630_vm7, %v640_v37, %v641_v52  ;;  %v2516_v18 = vrot.slane %v1796_v14, 1  ;;  %v2517_v38 = vrot.slane %v1928_v62, 1  ;;  %v2518_v29 = vrot.slane %v1829_v27, 1 }
 0x127   : > { %v2170_v8 = vsel %vm630_vm7, %v2513_v12, %v2512_v31  ;;  %v2177_v21 = vsel %vm449_vm6, %v2515_v15, %v2514_v26  ;;  %v2519_v7 = vrot.slane %v1972_v43, 1  ;;  %v2520_v3 = vrot.slane %v1845_v32, 1 }
 0x128   : > { %v2187_v46 = vsel %vm449_vm6, %v2517_v38, %v2516_v18  ;;  %v2521_v39 = vrot.slane %v1999_v5, 1  ;;  %v2205_v14 = vsel %vm630_vm7, %v994_v42, %v995_v48  ;;  %v2522_v27 = vrot.slane %v2043_v9, 2 }
 0x129   : > { %v2194_v23 = vsel %vm449_vm6, %v2519_v7, %v2518_v29  ;;  %v2213_v43 = vsel %vm630_vm7, %v991_v35, %v992_v53  ;;  %v2216_v32 = vsel %vm630_vm7, %v997_v51, %v998_v30  ;;  %v741_v5 = vmul.f32 %v2126_v55, %v1751_v59 }
 0x12a   : > { %v2201_v37 = vsel %vm449_vm6, %v2521_v39, %v2520_v3  ;;  %588 = vrot.lane.b32.xlu2 %v581_v49, %s1499_s5  ;;  %v2210_v62 = vsel %vm630_vm7, %v2522_v27, %v989_v25  ;;  %v742_v52 = vmul.f32 %v2126_v55, %v1833_v28  ;;  %v753_v42 = vsel %vm630_vm7, %v751_v47, %v752_v16  ;;  %v2526_v3 = vld [vmem:[#allocation18_spill] sm:$0xff]  ;;  %v2527_v39 = vld [vmem:[#allocation11_spill] sm:$0xff] }
 0x12b   : > { %v739_v9 = vmul.f32 %v2124_v4, %v1745_v56  ;;  %v740_v25 = vmul.f32 %v2124_v4, %v1818_v24  ;;  %763 = vrot.lane.b32.xlu1 %v753_v42, %s1499_s5  ;;  %v698_v51 = vsel %vm630_vm7, %v696_v61, %v697_v58  ;;  %v693_v53 = vrot.slane %v675_v60, 2 }
 0x12c   : > { %v694_v35 = vrot.slane %v676_v34, 2  ;;  %705 = vrot.lane.b32.xlu0 %v698_v51, %s1498_s4  ;;  %v2231_v48 = vstv %s2100_s28  ;;  %v760_v28 = vrot.slane %v741_v5, 2  ;;  %v761_v30 = vrot.slane %v742_v52, 2  ;;  %v2528_v5 = vld [vmem:[#allocation12_spill] sm:$0xff]  ;;  %v2530_v51 = vld [vmem:[#allocation17_spill] sm:$0xff] }
 0x12d   : > { %v757_v47 = vrot.slane %v739_v9, 2  ;;  %v758_v16 = vrot.slane %v740_v25, 2  ;;  %v737_v49 = vmul.f32 %v2231_v48, %v1740_v54  ;;  %v738_v24 = vmul.f32 %v2231_v48, %v1805_v19  ;;  %v2529_v9 = vld [vmem:[#allocation9_spill] sm:$0xff] }
 0x12e   : > { %v695_v1 = vsel %vm630_vm7, %v693_v53, %v694_v35  ;;  %v315_v61 = vstv %s1717_s8  ;;  %v884_v60 = vmul.f32 %v1849_v33, %v1877_v41  ;;  %v885_v34 = vmul.f32 %v1785_v10, %v1877_v41  ;;  %v2531_v53 = vld [vmem:[#allocation15_spill] sm:$0xff] }
 0x12f   : > { %v762_v58 = vsel %vm630_vm7, %v760_v28, %v761_v30  ;;  %v888_v17 = vmul.f32 %v2524_v36, %v2523_v57  ;;  %v889_v19 = vmul.f32 %v2525_v63, %v2523_v57  ;;  %v759_v22 = vsel %vm630_vm7, %v757_v47, %v758_v16  ;;  %v2532_v28 = vld [vmem:[#allocation14_spill] sm:$0xff]  ;;  %v2533_v16 = vld [vmem:[#allocation21_spill] sm:$0xff] }
 0x130   : > { %v323_v2 = vmul.f32 %v315_v61, %v1745_v56  ;;  %v754_v31 = vrot.slane %v737_v49, 2  ;;  %v755_v12 = vrot.slane %v738_v24, 2  ;;  %v900_v26 = vrot.slane %v884_v60, 1 }
 0x131   : > { %v901_v15 = vrot.slane %v885_v34, 1  ;;  %v307_v38 = vstv %s1713_s6  ;;  %v906_v29 = vrot.slane %v888_v17, 1  ;;  %v907_v7 = vrot.slane %v889_v19, 1  ;;  %s1238_s6 = sshll.u32 %s1485_s12, 6  ;;  %s1101_s12 = scalar_lea.sflag [#allocation5], %s1592_s15 }
 0x132   : > { %703 = vrot.lane.b32.xlu2 %v695_v1, %s1498_s4  ;;  %v886_v27 = vmul.f32 %v2527_v39, %v2526_v3  ;;  %v887_v52 = vmul.f32 %v2528_v5, %v2526_v3  ;;  %v756_v56 = vsel %vm630_vm7, %v754_v31, %v755_v12  ;;  %v321_v25 = vmul.f32 %v307_v38, %v2529_v9  ;;  %v2534_v12 = vld [vmem:[#allocation19_spill] sm:$0xff] }
 0x133   : > { %769 = vrot.lane.b32.xlu1 %v762_v58, %s1499_s5  ;;  %v890_v35 = vmul.f32 %v2531_v53, %v2530_v51  ;;  %v891_v30 = vmul.f32 %v2532_v28, %v2530_v51  ;;  %v902_v47 = vsel %vm449_vm6, %v900_v26, %v901_v15  ;;  %v930_v49 = vmul.f32 %v2527_v39, %v2533_v16 }
 0x134   : > { %767 = vrot.lane.b32.xlu0 %v759_v22, %s1499_s5  ;;  %v931_v24 = vmul.f32 %v2528_v5, %v2533_v16  ;;  %v908_v1 = vsel %vm449_vm6, %v906_v29, %v907_v7  ;;  %v903_v60 = vrot.slane %v886_v27, 1  ;;  %v904_v34 = vrot.slane %v887_v52, 1  ;;  %v2535_v29 = vld [vmem:[#allocation20_spill] sm:$0xff] }
 0x135   : > { %v909_v17 = vrot.slane %v890_v35, 1  ;;  %v910_v19 = vrot.slane %v891_v30, 1  ;;  %v929_v26 = vmul.f32 %v1785_v10, %v2534_v12  ;;  %v932_v7 = vmul.f32 %v2524_v36, %v2535_v29  ;;  %v2536_v52 = vld [vmem:[#allocation24_spill] sm:$0xff] }
 0x136   : > { %v948_v31 = vrot.slane %v931_v24, 1  ;;  %v905_v15 = vsel %vm449_vm6, %v903_v60, %v904_v34  ;;  %v933_v3 = vmul.f32 %v2525_v63, %v2535_v29  ;;  %v2537_v24 = vld [vmem:[#allocation22_spill] sm:$0xff] }
 0x137   : > { %v911_v27 = vsel %vm449_vm6, %v909_v17, %v910_v19  ;;  %v945_v51 = vrot.slane %v929_v26, 1  ;;  %v950_v35 = vrot.slane %v932_v7, 1  ;;  %v935_v60 = vmul.f32 %v2532_v28, %v2537_v24 }
 0x138   : > { %v951_v30 = vrot.slane %v933_v3, 1 }
 0x139   : > { %v954_v29 = vrot.slane %v935_v60, 1  ;;  %v1053_v60 = vmul.f32 %v1785_v10, %v2090_v44 }
 0x13a   : > { %765 = vrot.lane.b32.xlu2 %v756_v56, %s1499_s5  ;;  %v358_v42 = vpop.permute.xlu0 %357  ;;  %v1008_v56 = vmul.f32 %v1849_v33, %v2536_v52 }
 0x13b   : > { %912 = vrot.lane.b32.xlu1 %v902_v47, %s1498_s4  ;;  %v369_v58 = vadd.f32 %v358_v42, %v321_v25  ;;  %v1009_v42 = vmul.f32 %v1785_v10, %v2536_v52 }
 0x13c   : > { %916 = vrot.lane.b32.xlu0 %v908_v1, %s1498_s4  ;;  %v1024_v16 = vrot.slane %v1008_v56, 2  ;;  %v934_v1 = vmul.f32 %v2531_v53, %v2537_v24  ;;  %v311_v24 = vstv %s1715_s7 }
 0x142   : > { %914 = vrot.lane.b32.xlu2 %v905_v15, %s1498_s4  ;;  %v953_v15 = vrot.slane %v934_v1, 1  ;;  %v1052_v1 = vmul.f32 %v1849_v33, %v2090_v44 }
 0x143   : > { %918 = vrot.lane.b32.xlu1 %v911_v27, %s1498_s4  ;;  %v792_v27 = vmul.f32 %v1849_v33, %v307_v38 }
 0x144   : > { %v362_v41 = vpop.permute.xlu2 %361 }
 0x145   : > { %v2255_v18 = vadd.f32 %v362_v41, %v323_v2  ;;  %v947_v2 = vrot.slane %v930_v49, 1  ;;  %v928_v41 = vmul.f32 %v1849_v33, %v2534_v12  ;;  %v1025_v49 = vrot.slane %v1009_v42, 2 }
 0x147   : > { %v949_v9 = vsel %vm449_vm6, %v947_v2, %v948_v31  ;;  %v944_v25 = vrot.slane %v928_v41, 1  ;;  %v952_v2 = vsel %vm449_vm6, %v950_v35, %v951_v30  ;;  %v2539_v31 = vld [vmem:[#allocation25_spill] sm:$0xff]  ;;  %v1026_v26 = vsel %vm630_vm7, %v1024_v16, %v1025_v49 }
 0x148   : > { %958 = vrot.lane.b32.xlu0 %v949_v9, %s1499_s5  ;;  %v1014_v12 = vmul.f32 %v2531_v53, %v2539_v31  ;;  %v1015_v41 = vmul.f32 %v2532_v28, %v2539_v31  ;;  %v1012_v16 = vmul.f32 %v2524_v36, %v2098_v11  ;;  %v1013_v49 = vmul.f32 %v2525_v63, %v2098_v11 }
 0x149   : > { %v946_v34 = vsel %vm449_vm6, %v944_v25, %v945_v51  ;;  %v1057_v11 = vmul.f32 %v2525_v63, %v2124_v4  ;;  %v1068_v31 = vrot.slane %v1052_v1, 2 }
 0x14a   : > { %956 = vrot.lane.b32.xlu2 %v946_v34, %s1499_s5  ;;  %v1033_v25 = vrot.slane %v1014_v12, 2  ;;  %v1034_v51 = vrot.slane %v1015_v41, 2 }
 0x14b   : > { %960 = vrot.lane.b32.xlu1 %v952_v2, %s1499_s5  ;;  %v1031_v2 = vrot.slane %v1013_v49, 2 }
 0x14c   : > { %v402_v57 = vpop.permute.xlu2 %401 }
 0x14d   : > { %v2277_v22 = vadd.f32 %v402_v57, %v369_v58  ;;  %v319_v58 = vstv %s1719_s18  ;;  %v2538_v57 = vld [vmem:[#allocation23_spill] sm:$0xff]  ;;  %s1115_s18 = scalar_lea.hbm %s2443_s2, %s1238_s6 }
 0x14e   : > { %v1010_v17 = vmul.f32 %v2527_v39, %v2538_v57  ;;  %v1011_v19 = vmul.f32 %v2528_v5, %v2538_v57  ;;  %v324_v3 = vmul.f32 %v319_v58, %v1751_v59  ;;  %v955_v59 = vsel %vm449_vm6, %v953_v15, %v954_v29  ;;  %s1118_s20 = sshll.u32 %s1115_s18, 4  ;;  %s1119_s20 = int_to_ptr.hbm [resolvable:$true] %s1118_s20 }
 0x14f   : > { %v322_v57 = vmul.f32 %v311_v24, %v1740_v54  ;;  %v795_v10 = vmul.f32 %v2531_v53, %v319_v58  ;;  %v1069_v54 = vrot.slane %v1053_v60, 2  ;;  %v1075_v15 = vrot.slane %v1057_v11, 2  ;;  %s1425_s19 = sshra.s32 %s1119_s20, 4  ;;  %s1426_s19 = int_to_ptr.hbm [resolvable:$true] %s1425_s19 }
 0x150   : > { %1036 = vrot.lane.b32.xlu0 %v1026_v26, %s1498_s4  ;;  %v1027_v52 = vrot.slane %v1010_v17, 2  ;;  %v1028_v56 = vrot.slane %v1011_v19, 2  ;;  %v1056_v17 = vmul.f32 %v2524_v36, %v2124_v4  ;;  %v1030_v19 = vrot.slane %v1012_v16, 2  ;;  %s1427_s25 = scalar_lea.hbm %s1426_s19, 64  ;;  %p1432_p7 = scmp.lt.s32.totalorder %s1426_s19, %s2443_s2 }
 0x151   : > { %v1054_v29 = vmul.f32 %v2527_v39, %v2231_v48  ;;  %p1428_p4 = scmp.ne.s32.totalorder %s1426_s19, %s1427_s25  ;;  %p1433_p8 = scmp.lt.s32.totalorder %s1431_s16, %s1427_s25 }
 0x152   : > { %962 = vrot.lane.b32.xlu2 %v955_v59, %s1499_s5  ;;  %v1029_v34 = vsel %vm630_vm7, %v1027_v52, %v1028_v56  ;;  %v1074_v26 = vrot.slane %v1056_v17, 2  ;;  %v1058_v52 = vmul.f32 %v2531_v53, %v2126_v55  ;;  %v1059_v56 = vmul.f32 %v2532_v28, %v2126_v55 }
 0x153   : > { %1038 = vrot.lane.b32.xlu1 %v1029_v34, %s1498_s4  ;;  %p1429_p5 = pnand %p1428_p4, %p1569_p9  ;;  %p1434_p10 = por %p1433_p8, %p1432_p7 }
 0x154   : > { %v408_v47 = vpop.permute.xlu2 %407 }
 0x155   : > { %p1430_p6 = pneg %p1429_p5 }
 0x157   : > { %p1435_p13 = pnand %p1434_p10, %p1430_p6 }
 0x15b   : > { %v360_v7 = vpop.permute.xlu1 %359 }
 0x15c   : > { %v809_v42 = vpop.permute.xlu2 %808  ;;  %v370_v33 = vadd.f32 %v360_v7, %v322_v57  ;;  %v466_v7 = vadd.f32 %v2143_v40, %v2277_v22  ;;  %v1077_v22 = vrot.slane %v1058_v52, 2 }
 0x15d   : > { %v364_v9 = vpop.permute.xlu0 %363  ;;  %v2318_v35 = vadd.f32 %v809_v42, %v792_v27  ;;  %v1032_v27 = vsel %vm630_vm7, %v1030_v19, %v1031_v2  ;;  %v1070_v42 = vsel %vm630_vm7, %v1068_v31, %v1069_v54 }
 0x15e   : > { %v372_v30 = vadd.f32 %v364_v9, %v324_v3  ;;  %v1055_v3 = vmul.f32 %v2528_v5, %v2231_v48  ;;  %1040 = vrot.lane.b32.xlu2 %v1032_v27, %s1498_s4  ;;  %1080 = vrot.lane.b32.xlu1 %v1070_v42, %s1499_s5  ;;  %v1076_v48 = vsel %vm630_vm7, %v1074_v26, %v1075_v15  ;;  %v1071_v9 = vrot.slane %v1054_v29, 2 }
 0x15f   : > { %v794_v5 = vmul.f32 %v2524_v36, %v315_v61 }
 0x160   : > { %v416_v38 = vadd.f32 %v408_v47, %v372_v30  ;;  %v1035_v47 = vsel %vm630_vm7, %v1033_v25, %v1034_v51  ;;  %v1078_v25 = vrot.slane %v1059_v56, 2  ;;  %v793_v51 = vmul.f32 %v2527_v39, %v311_v24 }
 0x161   : > { %1042 = vrot.lane.b32.xlu0 %v1035_v47, %s1498_s4  ;;  %s2540_s4 = sshll.u32 %s1592_s15, 6 }
 0x162   : > { %v1079_v61 = vsel %vm630_vm7, %v1077_v22, %v1078_v25  ;;  %v469_v1 = vadd.f32 %v2150_v0, %v416_v38 }
 0x164   : > { %v406_v44 = vpop.permute.xlu1 %405  ;;  %v815_v12 = vpop.permute.xlu2 %814 }
 0x165   : > { %v404_v41 = vpop.permute.xlu0 %403  ;;  %v823_v4 = vadd.f32 %v815_v12, %v795_v10  ;;  %v415_v36 = vadd.f32 %v406_v44, %v2255_v18 }
 0x166   : > { %v414_v63 = vadd.f32 %v404_v41, %v370_v33  ;;  %1086 = vrot.lane.b32.xlu1 %v1079_v61, %s1499_s5 }
 0x167   : > { %v468_v24 = vadd.f32 %v2157_v45, %v415_v36 }
 0x168   : > { %v467_v58 = vadd.f32 %v2136_v6, %v414_v63  ;;  %v1072_v6 = vrot.slane %v1055_v3, 2 }
 0x169   : > { %1084 = vrot.lane.b32.xlu0 %v1076_v48, %s1499_s5 }
 0x16a   : > { %v1073_v30 = vsel %vm630_vm7, %v1071_v9, %v1072_v6 }
 0x16b   : > { %1082 = vrot.lane.b32.xlu2 %v1073_v30, %s1499_s5  ;;  %s2380_s5 = scalar_lea.vmem [#allocation6], %s2540_s4 }
 0x16c   : > { %v813_v40 = vpop.permute.xlu1 %812  ;;  %v837_v55 = vpop.permute.xlu2 %836  ;;  %s1116_s3 = sshll.u32 %s2380_s5, 4  ;;  %s1117_s3 = int_to_ptr.vmem [resolvable:$true] %s1116_s3 }
 0x16d   : > { %v822_v53 = vadd.f32 %v813_v40, %v794_v5  ;;  %v811_v28 = vpop.permute.xlu0 %810 }
 0x16e   : > { %v821_v49 = vadd.f32 %v811_v28, %v793_v51 }
 0x16f   : > { %v846_v16 = vadd.f32 %v837_v55, %v822_v53 }
 0x171   : > { %v882_v2 = vadd.f32 %v2194_v23, %v846_v16 }
 0x174   : > { %v835_v59 = vpop.permute.xlu1 %834  ;;  %v521_v11 = vpop.permute.xlu2 %520 }
 0x175   : > { %v845_v60 = vadd.f32 %v835_v59, %v821_v49  ;;  %v833_v34 = vpop.permute.xlu0 %832  ;;  %v531_v15 = vadd.f32 %v521_v11, %v467_v58 }
 0x176   : > { %v844_v39 = vadd.f32 %v833_v34, %v2318_v35 }
 0x177   : > { %v881_v18 = vadd.f32 %v2177_v21, %v845_v60 }
 0x178   : > { %v880_v38 = vadd.f32 %v2187_v46, %v844_v39 }
 0x17c   : > { %v583_v47 = vpop.permute.xlu2 %582  ;;  %v519_v19 = vpop.permute.xlu1 %518 }
 0x17d   : > { %v839_v57 = vpop.permute.xlu0 %838  ;;  %v530_v10 = vadd.f32 %v519_v19, %v466_v7 }
 0x17e   : > { %v847_v17 = vadd.f32 %v839_v57, %v823_v4 }
 0x17f   : > { %v594_v33 = vadd.f32 %v583_v47, %v530_v10 }
 0x180   : > { %v883_v26 = vadd.f32 %v2201_v37, %v847_v17 }
 0x181   : > { %v647_v44 = vadd.f32 %v2170_v8, %v594_v33 }
 0x184   : > { %v589_v0 = vpop.permute.xlu2 %588  ;;  %v525_v35 = vpop.permute.xlu1 %524 }
 0x185   : > { %v523_v31 = vpop.permute.xlu0 %522  ;;  %v533_v54 = vadd.f32 %v525_v35, %v469_v1 }
 0x186   : > { %v532_v23 = vadd.f32 %v523_v31, %v468_v24 }
 0x187   : > { %v597_v45 = vadd.f32 %v589_v0, %v533_v54 }
 0x189   : > { %v650_v12 = vadd.f32 %v2180_v20, %v597_v45 }
 0x18c   : > { %v704_v41 = vpop.permute.xlu2 %703  ;;  %v587_v4 = vpop.permute.xlu1 %586 }
 0x18d   : > { %v596_v63 = vadd.f32 %v587_v4, %v532_v23  ;;  %v585_v21 = vpop.permute.xlu0 %584 }
 0x18e   : > { %v595_v29 = vadd.f32 %v585_v21, %v531_v15 }
 0x18f   : > { %v649_v8 = vadd.f32 %v2160_v13, %v596_v63 }
 0x190   : > { %v648_v46 = vadd.f32 %v2163_v50, %v595_v29 }
 0x191   : > { %v713_v48 = vadd.f32 %v704_v41, %v649_v8 }
 0x194   : > { %v702_v3 = vpop.permute.xlu1 %701  ;;  %v766_v27 = vpop.permute.xlu2 %765 }
 0x195   : > { %v712_v7 = vadd.f32 %v702_v3, %v648_v46  ;;  %v700_v52 = vpop.permute.xlu0 %699 }
 0x196   : > { %v711_v37 = vadd.f32 %v700_v52, %v647_v44 }
 0x197   : > { %v776_v20 = vadd.f32 %v766_v27, %v712_v7 }
 0x199   : > { %781 = vst.msk [vmem:[%s2380_s5 + $0x10] sm:$0xff] %vm779_vm8, %v776_v20 }
 0x19c   : > { %v915_v50 = vpop.permute.xlu2 %914 }
 0x19d   : > { %v764_v58 = vpop.permute.xlu1 %763  ;;  %v925_v16 = vadd.f32 %v915_v50, %v881_v18 }
 0x19e   : > { %v775_v13 = vadd.f32 %v764_v58, %v711_v37  ;;  %v706_v56 = vpop.permute.xlu0 %705 }
 0x19f   : > { %v714_v42 = vadd.f32 %v706_v56, %v650_v12 }
 0x1a0   : > { %780 = vst.msk [vmem:[%s2380_s5] sm:$0xff] %vm779_vm8, %v775_v13 }
 0x1a4   : > { %v957_v22 = vpop.permute.xlu2 %956 }
 0x1a5   : > { %v770_v5 = vpop.permute.xlu1 %769 }
 0x1a6   : > { %v778_v9 = vadd.f32 %v770_v5, %v714_v42  ;;  %v768_v6 = vpop.permute.xlu0 %767 }
 0x1a7   : > { %v777_v40 = vadd.f32 %v768_v6, %v713_v48 }
 0x1a8   : > { %783 = vst.msk [vmem:[%s2380_s5 + $0x30] sm:$0xff] %vm779_vm8, %v778_v9 }
 0x1a9   : > { %782 = vst.msk [vmem:[%s2380_s5 + $0x20] sm:$0xff] %vm779_vm8, %v777_v40 }
 0x1ac   : > { %v963_v30 = vpop.permute.xlu2 %962 }
 0x1ad   : > { %v913_v25 = vpop.permute.xlu1 %912 }
 0x1ae   : > { %v924_v53 = vadd.f32 %v913_v25, %v880_v38  ;;  %v917_v51 = vpop.permute.xlu0 %916 }
 0x1af   : > { %v926_v39 = vadd.f32 %v917_v51, %v882_v2 }
 0x1b0   : > { %v968_v55 = vadd.f32 %v957_v22, %v924_v53 }
 0x1b2   : > { %v1004_v28 = vadd.f32 %v2210_v62, %v968_v55 }
 0x1b5   : > { %v919_v49 = vpop.permute.xlu1 %918 }
 0x1b6   : > { %v927_v61 = vadd.f32 %v919_v49, %v883_v26 }
 0x1b8   : > { %v971_v1 = vadd.f32 %v963_v30, %v927_v61  ;;  %v1041_v24 = vpop.permute.xlu2 %1040 }
 0x1ba   : > { %v959_v36 = vpop.permute.xlu0 %958  ;;  %v1007_v34 = vadd.f32 %v2216_v32, %v971_v1 }
 0x1bb   : > { %v969_v59 = vadd.f32 %v959_v36, %v925_v16 }
 0x1bd   : > { %v1005_v60 = vadd.f32 %v2213_v43, %v969_v59  ;;  %v961_v57 = vpop.permute.xlu1 %960 }
 0x1be   : > { %v970_v17 = vadd.f32 %v961_v57, %v926_v39 }
 0x1c0   : > { %v1006_v62 = vadd.f32 %v2205_v14, %v970_v17 }
 0x1c2   : > { %v1037_v11 = vpop.permute.xlu0 %1036  ;;  %v1050_v2 = vadd.f32 %v1041_v24, %v1006_v62 }
 0x1c3   : > { %v1048_v43 = vadd.f32 %v1037_v11, %v1004_v28 }
 0x1c5   : > { %v1039_v47 = vpop.permute.xlu1 %1038  ;;  %v1083_v33 = vpop.permute.xlu2 %1082 }
 0x1c6   : > { %v1049_v19 = vadd.f32 %v1039_v47, %v1005_v60 }
 0x1c8   : > { %v1093_v18 = vadd.f32 %v1083_v33, %v1049_v19 }
 0x1ca   : > { %1097 = vst.msk [vmem:[%s2380_s5 + $0x18] sm:$0xff] %vm779_vm8, %v1093_v18 }
 0x1d0   : > { %v1081_v32 = vpop.permute.xlu1 %1080 }
 0x1d1   : > { %v1092_v44 = vadd.f32 %v1081_v32, %v1048_v43 }
 0x1d3   : > { %v1043_v10 = vpop.permute.xlu0 %1042  ;;  %1096 = vst.msk [vmem:[%s2380_s5 + $0x8] sm:$0xff] %vm779_vm8, %v1092_v44 }
 0x1d4   : > { %v1051_v14 = vadd.f32 %v1043_v10, %v1007_v34 }
 0x1d8   : > { %v1087_v31 = vpop.permute.xlu1 %1086 }
 0x1d9   : > { %v1095_v35 = vadd.f32 %v1087_v31, %v1051_v14 }
 0x1db   : > { %v1085_v0 = vpop.permute.xlu0 %1084  ;;  %1099 = vst.msk [vmem:[%s2380_s5 + $0x38] sm:$0xff] %vm779_vm8, %v1095_v35 }
 0x1dc   : > { %v1094_v38 = vadd.f32 %v1085_v0, %v1050_v2 }
 0x1de   : > { %1098 = vst.msk [vmem:[%s2380_s5 + $0x28] sm:$0xff] %vm779_vm8, %v1094_v38 }
 0x1df   : > { %1438 = shalt.err (!%p1435_p13)
}
 0x1e0   : > { %s1501_s15 = smov 128   ;;  %s1502_s27 = smov 8  }
 0x1e1   : > { %1313 = dma.vmem_to_hbm [thread:$0]  (%p1569_p9), %s1117_s3, 1024, %s1119_s20, %s1101_s12, %s1501_s15, %s1501_s15, %s1502_s27  }
 0x1e2 PF: > { %s1133_s28 = sand.u32 1, %s1473_s9   ;;  %p1320_p0 = pnand %p1225_p12, %p1576_p11 }
 0x1e3   : > { %s1134_s30 = scalar_lea.sflag [#allocation5], %s1133_s28 }
 0x1e4   : > { %p1321_p1 = pneg %p1320_p0 }
 0x1e6   : > { %1468 = dma.done.wait (%p1321_p1), %s1134_s30, 1024  }
 0x1e7   : > { %1470 = vsyncadd (%p1321_p1), %s1134_s30, 4294966272  ;;  %s18_s14 = sadd.s32 1, %s1493_s14   ;;  %s2541_s9 = smov %s1477_s10 }
 0x1e8   : > { %p15_p2 = scmp.ge.s32.totalorder %s18_s14, 4   ;;  %s2542_s10 = smov %s1481_s11 }
 0x1e9   : > { %s2543_s11 = smov %s1574_s23  ;;  %s2544_s12 = smov %s1489_s13 }
 0x1ea   : > { %s2545_s13 = smov %s2547_s17  ;;  %17 = sbr.rel (!%p15_p2) target bundleno = 9 (0x9), region = 76 }
 0x1ef   :  { %1140 = vsyncpa [#allocation4], 1 }
 0x1f0   :  { %1142 = vsyncpa [#allocation4 + $0x1], 1 }
 0x1f1   :  { %1143 = vsyncpa [#allocation5], 1 }
 0x1f2   :  { %1145 = vsyncpa [#allocation5 + $0x1], 1 }

</bundles_post_ra>
